<compile_context>
chip_gen: v7x
topology: tpu7x:2x2x1
jax: 0.10.0
libtpu: 0.0.40
codegen_flags: <defaults>
</compile_context>

<pallas_src>
import functools

import jax
import jax.numpy as jnp
from jax.experimental import pallas as pl
from jax.experimental.pallas import tpu as pltpu

LANE = 128      # lane width: channel dims padded to multiples of this
SUBLANE = 16    # bf16 sublane packing: row dims padded to multiples of this
TM_MAX = 256    # target-row tile (M of every matmul); >=256 keeps v6e/v7x MXU fed
TK_MAX = 512    # source-row (reduction) tile


# ----------------------------------------------------------------------------
# Kernel: one SAGEConv (mean aggregation, normalize=True, optional ReLU)
# ----------------------------------------------------------------------------
def sage_conv_kernel(a_ref, inv_deg_ref, x_src_ref, x_tgt_ref,
                     w_l_ref, w_r_ref, b_ref, o_ref, acc_ref, *, apply_relu):
    """grid = (tgt_tiles, src_tiles); src is the reduction axis (last, "arbitrary").

    acc_ref accumulates sum_k A[i, k] @ X[k] in f32; the 1/deg scale, the two
    linear maps, bias, L2-normalize and ReLU run once in the epilogue.
    """
    k = pl.program_id(1)

    @pl.when(k == 0)
    def _():
        acc_ref[...] = jnp.zeros_like(acc_ref)

    # Partial neighbor-sum for this source tile (bf16 operands, f32 MXU accumulate).
    acc_ref[...] += jnp.dot(a_ref[...], x_src_ref[...],
                            preferred_element_type=jnp.float32)

    @pl.when(k == pl.num_programs(1) - 1)
    def _():
        # mean aggregation: exact host-precomputed 1/deg
        aggr = (acc_ref[...] * inv_deg_ref[...]).astype(jnp.bfloat16)
        # Two accumulating MXU dots (no [aggr ; x_tgt] concat buffer).
        h = jnp.dot(aggr, w_l_ref[...], preferred_element_type=jnp.float32)
        h += jnp.dot(x_tgt_ref[...], w_r_ref[...], preferred_element_type=jnp.float32)
        h += b_ref[...]
        # F.normalize(h, p=2, dim=-1), eps=1e-12  (padded lanes are exactly zero)
        h *= jax.lax.rsqrt(jnp.maximum(jnp.sum(h * h, axis=-1, keepdims=True), 1e-24))
        if apply_relu:
            h = jnp.maximum(h, 0.0)
        o_ref[...] = h.astype(o_ref.dtype)


# ----------------------------------------------------------------------------
# Host-side helpers
# ----------------------------------------------------------------------------
def _round_up(n, m):
    return ((n + m - 1) // m) * m


def _pick_tile(n, max_tile, align):
    """(tile, padded_extent) so tile evenly divides the padded extent."""
    n_pad = _round_up(max(n, align), align)
    if n_pad <= max_tile:
        return n_pad, n_pad
    return max_tile, _round_up(n_pad, max_tile)


def _pad2(a, rows, cols):
    return jnp.pad(a, ((0, rows - a.shape[0]), (0, cols - a.shape[1])))


def _fit_rows(a, rows):
    if a.shape[0] < rows:
        return jnp.pad(a, ((0, rows - a.shape[0]), (0, 0)))
    return a[:rows]


def build_count_adj(edge_index, n_src, n_tgt):
    """Dense neighbor-count matrix. edge_index[0]=source ids, edge_index[1]=target ids."""
    src, tgt = edge_index[0], edge_index[1]
    return jnp.zeros((n_tgt, n_src), jnp.float32).at[tgt, src].add(1.0)


def sage_conv(a_counts, x_src, n_src, n_tgt, w_l, w_r, b, *, apply_relu):
    """One SAGEConv(mean, normalize=True) layer as a tiled, pipelined Pallas call.

    a_counts : [n_tgt, n_src] f32 dense neighbor-count matrix (unpadded)
    x_src    : [>=n_src, C]   source-node features; rows >= n_src are ignored
                              (their adjacency columns are zero)
    returns  : [n_tgt_p, Hp]  bf16 lane-dense padded output; valid region is
                              [:n_tgt, :H] (slice at the final consumer only)
    """
    c_in = x_src.shape[1]
    h_out = w_l.shape[1]
    c_p = _round_up(c_in, LANE)
    h_p = _round_up(h_out, LANE)

    tm, n_tgt_p = _pick_tile(n_tgt, TM_MAX, SUBLANE)
    tk, n_src_p = _pick_tile(n_src, TK_MAX, SUBLANE)

    # Exact per-target 1/deg on the host (padded rows -> 0).
    inv_deg = 1.0 / jnp.maximum(jnp.sum(a_counts, axis=1, keepdims=True), 1.0)
    inv_deg_p = _pad2(inv_deg, n_tgt_p, 1).astype(jnp.float32)

    # bf16 count adjacency (exact for counts <= 256), zero-padded to tile multiples.
    a_p = _pad2(a_counts, n_tgt_p, n_src_p).astype(jnp.bfloat16)

    x_src_cp = _pad2(x_src, x_src.shape[0], c_p).astype(jnp.bfloat16)
    x_src_p = _fit_rows(x_src_cp, n_src_p)            # [n_src_p, c_p]
    x_tgt_p = _fit_rows(x_src_cp[:n_tgt], n_tgt_p)    # [n_tgt_p, c_p]

    w_l_p = _pad2(w_l, c_p, h_p).astype(jnp.bfloat16)
    w_r_p = _pad2(w_r, c_p, h_p).astype(jnp.bfloat16)
    b_p = _pad2(b, 1, h_p).astype(jnp.float32)

    grid = (n_tgt_p // tm, n_src_p // tk)

    out_p = pl.pallas_call(
        functools.partial(sage_conv_kernel, apply_relu=apply_relu),
        out_shape=jax.ShapeDtypeStruct((n_tgt_p, h_p), jnp.bfloat16),
        grid_spec=pltpu.PrefetchScalarGridSpec(
            num_scalar_prefetch=0,
            grid=grid,
            in_specs=[
                pl.BlockSpec((tm, tk), lambda i, k: (i, k)),      # adjacency counts
                pl.BlockSpec((tm, 1), lambda i, k: (i, 0)),       # 1/deg
                pl.BlockSpec((tk, c_p), lambda i, k: (k, 0)),     # source features
                pl.BlockSpec((tm, c_p), lambda i, k: (i, 0)),     # target features
                pl.BlockSpec((c_p, h_p), lambda i, k: (0, 0)),    # W_l (resident)
                pl.BlockSpec((c_p, h_p), lambda i, k: (0, 0)),    # W_r (resident)
                pl.BlockSpec((1, h_p), lambda i, k: (0, 0)),      # bias (resident)
            ],
            out_specs=pl.BlockSpec((tm, h_p), lambda i, k: (i, 0)),
            scratch_shapes=[pltpu.VMEM((tm, c_p), jnp.float32)],  # A@X accumulator
        ),
        compiler_params=pltpu.CompilerParams(
            dimension_semantics=("parallel", "arbitrary"),
            vmem_limit_bytes=48 * 1024 * 1024,   # > v5e's 16 MiB default, < v7x's 64 MiB
        ),
    )(a_p, inv_deg_p, x_src_p, x_tgt_p, w_l_p, w_r_p, b_p)
    return out_p


def sage_forward(x, adjs, params):
    """Mirrors SAGE.forward for num_layers=2: adjs = [(edge_index, (n_src, n_tgt)), ...].

    Returns the lane-dense padded bf16 slab of the last layer; the valid region is
    [:n_tgt_last, :hidden_channels] — slice at the final consumer, not here.
    """
    num_layers = len(params)
    h = x
    n_tgt = x.shape[0]
    for i, (edge_index, (n_src, n_tgt)) in enumerate(adjs):
        a = build_count_adj(edge_index, n_src, n_tgt)
        w_l, w_r, b = params[i]
        h = sage_conv(a, h, n_src, n_tgt, w_l, w_r, b,
                      apply_relu=(i != num_layers - 1))
    return h, n_tgt


# Pure-JAX f32 reference (matches PyG SAGEConv mean-aggr + normalize semantics).
def sage_reference(x, adjs, params):
    num_layers = len(params)
    h = x
    for i, (edge_index, (n_src, n_tgt)) in enumerate(adjs):
        a = build_count_adj(edge_index, n_src, n_tgt)
        deg = jnp.maximum(jnp.sum(a, axis=1, keepdims=True), 1.0)
        aggr = (a @ h) / deg
        w_l, w_r, b = params[i]
        out = aggr @ w_l + b + h[:n_tgt] @ w_r
        norm = jnp.sqrt(jnp.sum(out * out, axis=-1, keepdims=True))
        out = out / jnp.maximum(norm, 1e-12)
        if i != num_layers - 1:
            out = jnp.maximum(out, 0.0)
        h = out
    return h


def init_params(key, in_channels, hidden_channels):
    """Shapes from SAGEConv(in, hidden, normalize=True): (W_l, W_r, b_l) per layer."""
    params = []
    dims = [(in_channels, hidden_channels), (hidden_channels, hidden_channels)]
    for (cin, cout) in dims:
        key, k1, k2, k3 = jax.random.split(key, 4)
        scale = 1.0 / jnp.sqrt(jnp.float32(cin))
        w_l = jax.random.uniform(k1, (cin, cout), jnp.float32, -scale, scale)
        w_r = jax.random.uniform(k2, (cin, cout), jnp.float32, -scale, scale)
        b_l = jax.random.uniform(k3, (1, cout), jnp.float32, -scale, scale)
        params.append((w_l, w_r, b_l))
    return params


if __name__ == "__main__":
    key = jax.random.PRNGKey(0)

    in_channels = 16
    hidden_channels = 32

    # Sampled-subgraph sizes (NeighborSampler, 2 hops, reverse-ordered adjs).
    # Layer-1 source count > TK_MAX so the reduction axis spans 2 grid steps
    # (exercises the accumulator init / epilogue gating) while staying small.
    n1_src, n1_tgt = 600, 150
    n2_src, n2_tgt = 150, 64          # n2_src must equal n1_tgt

    key, kx, ke1s, ke1t, ke2s, ke2t = jax.random.split(key, 6)
    x = jax.random.normal(kx, (n1_src, in_channels), jnp.float32)

    n_edges1, n_edges2 = 1800, 450
    edge_index1 = jnp.stack([
        jax.random.randint(ke1s, (n_edges1,), 0, n1_src),
        jax.random.randint(ke1t, (n_edges1,), 0, n1_tgt),
    ])
    edge_index2 = jnp.stack([
        jax.random.randint(ke2s, (n_edges2,), 0, n2_src),
        jax.random.randint(ke2t, (n_edges2,), 0, n2_tgt),
    ])
    adjs = [(edge_index1, (n1_src, n1_tgt)),
            (edge_index2, (n2_src, n2_tgt))]

    params = init_params(key, in_channels, hidden_channels)

    out_pad, _ = sage_forward(x, adjs, params)
    jax.block_until_ready(out_pad)

    # Slice the padded lane-dense slab only at the final consumer.
    out = out_pad[:n2_tgt, :hidden_channels].astype(jnp.float32)
    assert out.shape == (n2_tgt, hidden_channels), out.shape

    # Sanity check against the f32 reference (bf16 matmul operands + bf16 output
    # -> loose tolerance; outputs are L2-normalized so magnitudes are <= 1).
    ref = sage_reference(x, adjs, params)
    max_err = float(jnp.max(jnp.abs(out - ref)))
    assert max_err < 0.15, f"max abs err vs reference: {max_err}"

    print("KERNEL_OK")
</pallas_src>

<mosaic_0001>
module attributes {stable_mosaic.version = 11 : i64} {
  func.func @sage_conv_kernel(%arg0: i32, %arg1: i32, %arg2: memref<160x512xbf16, #tpu.memory_space<vmem>>, %arg3: memref<160x1xf32, #tpu.memory_space<vmem>>, %arg4: memref<512x128xbf16, #tpu.memory_space<vmem>>, %arg5: memref<160x128xbf16, #tpu.memory_space<vmem>>, %arg6: memref<128x128xbf16, #tpu.memory_space<vmem>>, %arg7: memref<128x128xbf16, #tpu.memory_space<vmem>>, %arg8: memref<1x128xf32, #tpu.memory_space<vmem>>, %arg9: memref<160x128xbf16, #tpu.memory_space<vmem>>, %arg10: memref<160x128xf32, #tpu.memory_space<vmem>>) attributes {dimension_semantics = [#tpu.dimension_semantics<parallel>, #tpu.dimension_semantics<arbitrary>], iteration_bounds = array<i64: 1, 2>, scalar_prefetch = 0 : i64, scratch_operands = 1 : i64, tpu.core_type = #tpu.core_type<tc>, window_params = [{transform_indices = @transform_0, window_bounds = array<i64: 160, 512>}, {transform_indices = @transform_1, window_bounds = array<i64: 160, 1>}, {transform_indices = @transform_2, window_bounds = array<i64: 512, 128>}, {transform_indices = @transform_3, window_bounds = array<i64: 160, 128>}, {pipeline_mode = #tpu.pipeline_mode<synchronous>, transform_indices = @transform_4, window_bounds = array<i64: 128, 128>}, {pipeline_mode = #tpu.pipeline_mode<synchronous>, transform_indices = @transform_5, window_bounds = array<i64: 128, 128>}, {pipeline_mode = #tpu.pipeline_mode<synchronous>, transform_indices = @transform_6, window_bounds = array<i64: 1, 128>}, {transform_indices = @transform_7, window_bounds = array<i64: 160, 128>}]} {
    %c0_i32 = arith.constant 0 : i32
    %0 = arith.cmpi eq, %arg1, %c0_i32 : i32
    %1 = arith.extui %0 : i1 to i32
    %c0_i32_0 = arith.constant 0 : i32
    %2 = arith.cmpi ne, %1, %c0_i32_0 : i32
    scf.if %2 {
      %cst_9 = arith.constant 0.000000e+00 : f32
      %12 = vector.broadcast %cst_9 : f32 to vector<160x128xf32>
      %c0_10 = arith.constant 0 : index
      %c0_11 = arith.constant 0 : index
      %13 = vector.load %arg10[%c0_10, %c0_11] : memref<160x128xf32, #tpu.memory_space<vmem>>, vector<160x128xf32>
      tpu.vector_store %arg10[%c0_10, %c0_11], %12 {strides = array<i32>} : memref<160x128xf32, #tpu.memory_space<vmem>>, vector<160x128xf32>,
    } else {
    }
    %c0 = arith.constant 0 : index
    %c0_1 = arith.constant 0 : index
    %3 = vector.load %arg10[%c0, %c0_1] : memref<160x128xf32, #tpu.memory_space<vmem>>, vector<160x128xf32>
    %c0_2 = arith.constant 0 : index
    %c0_3 = arith.constant 0 : index
    %4 = vector.load %arg2[%c0_2, %c0_3] : memref<160x512xbf16, #tpu.memory_space<vmem>>, vector<160x512xbf16>
    %c0_4 = arith.constant 0 : index
    %c0_5 = arith.constant 0 : index
    %5 = vector.load %arg4[%c0_4, %c0_5] : memref<512x128xbf16, #tpu.memory_space<vmem>>, vector<512x128xbf16>
    %cst = arith.constant dense<0.000000e+00> : vector<160x128xf32>
    %6 = tpu.matmul %4, %5, %cst {dimension_numbers = #tpu.dot_dimension_numbers<[1], [0], [0], [1], [0, 0, 1, 1], [], []>} : vector<160x512xbf16>, vector<512x128xbf16>, vector<160x128xf32> -> vector<160x128xf32>
    %7 = arith.addf %3, %6 : vector<160x128xf32>
    %c0_6 = arith.constant 0 : index
    %c0_7 = arith.constant 0 : index
    %8 = vector.load %arg10[%c0_6, %c0_7] : memref<160x128xf32, #tpu.memory_space<vmem>>, vector<160x128xf32>
    tpu.vector_store %arg10[%c0_6, %c0_7], %7 {strides = array<i32>} : memref<160x128xf32, #tpu.memory_space<vmem>>, vector<160x128xf32>,
    %c1_i32 = arith.constant 1 : i32
    %9 = arith.cmpi eq, %arg1, %c1_i32 : i32
    %10 = arith.extui %9 : i1 to i32
    %c0_i32_8 = arith.constant 0 : i32
    %11 = arith.cmpi ne, %10, %c0_i32_8 : i32
    scf.if %11 {
      %c0_9 = arith.constant 0 : index
      %c0_10 = arith.constant 0 : index
      %12 = vector.load %arg10[%c0_9, %c0_10] : memref<160x128xf32, #tpu.memory_space<vmem>>, vector<160x128xf32>
      %c0_11 = arith.constant 0 : index
      %c0_12 = arith.constant 0 : index
      %13 = vector.load %arg3[%c0_11, %c0_12] : memref<160x1xf32, #tpu.memory_space<vmem>>, vector<160x1xf32>
      %14 = vector.broadcast %13 : vector<160x1xf32> to vector<160x128xf32>
      %15 = arith.mulf %12, %14 : vector<160x128xf32>
      %16 = arith.truncf %15 : vector<160x128xf32> to vector<160x128xbf16>
      %c0_13 = arith.constant 0 : index
      %c0_14 = arith.constant 0 : index
      %17 = vector.load %arg6[%c0_13, %c0_14] : memref<128x128xbf16, #tpu.memory_space<vmem>>, vector<128x128xbf16>
      %cst_15 = arith.constant dense<0.000000e+00> : vector<160x128xf32>
      %18 = tpu.matmul %16, %17, %cst_15 {dimension_numbers = #tpu.dot_dimension_numbers<[1], [0], [0], [1], [0, 0, 1, 1], [], []>} : vector<160x128xbf16>, vector<128x128xbf16>, vector<160x128xf32> -> vector<160x128xf32>
      %c0_16 = arith.constant 0 : index
      %c0_17 = arith.constant 0 : index
      %19 = vector.load %arg5[%c0_16, %c0_17] : memref<160x128xbf16, #tpu.memory_space<vmem>>, vector<160x128xbf16>
      %c0_18 = arith.constant 0 : index
      %c0_19 = arith.constant 0 : index
      %20 = vector.load %arg7[%c0_18, %c0_19] : memref<128x128xbf16, #tpu.memory_space<vmem>>, vector<128x128xbf16>
      %cst_20 = arith.constant dense<0.000000e+00> : vector<160x128xf32>
      %21 = tpu.matmul %19, %20, %cst_20 {dimension_numbers = #tpu.dot_dimension_numbers<[1], [0], [0], [1], [0, 0, 1, 1], [], []>} : vector<160x128xbf16>, vector<128x128xbf16>, vector<160x128xf32> -> vector<160x128xf32>
      %22 = arith.addf %18, %21 : vector<160x128xf32>
      %c0_21 = arith.constant 0 : index
      %c0_22 = arith.constant 0 : index
      %23 = vector.load %arg8[%c0_21, %c0_22] : memref<1x128xf32, #tpu.memory_space<vmem>>, vector<1x128xf32>
      %24 = vector.broadcast %23 : vector<1x128xf32> to vector<160x128xf32>
      %25 = arith.addf %22, %24 : vector<160x128xf32>
      %26 = arith.mulf %25, %25 : vector<160x128xf32>
      %cst_23 = arith.constant dense<0.000000e+00> : vector<160xf32>
      %27 = vector.multi_reduction <add>, %26, %cst_23 [1] : vector<160x128xf32> to vector<160xf32>
      %28 = vector.shape_cast %27 : vector<160xf32> to vector<160x1xf32>
      %cst_24 = arith.constant 1.000000e-24 : f32
      %29 = vector.broadcast %cst_24 : f32 to vector<160x1xf32>
      %30 = arith.maximumf %28, %29 : vector<160x1xf32>
      %31 = math.rsqrt %30 : vector<160x1xf32>
      %32 = vector.broadcast %31 : vector<160x1xf32> to vector<160x128xf32>
      %33 = arith.mulf %25, %32 : vector<160x128xf32>
      %cst_25 = arith.constant 0.000000e+00 : f32
      %34 = vector.broadcast %cst_25 : f32 to vector<160x128xf32>
      %35 = arith.maximumf %33, %34 : vector<160x128xf32>
      %36 = arith.truncf %35 : vector<160x128xf32> to vector<160x128xbf16>
      %c0_26 = arith.constant 0 : index
      %c0_27 = arith.constant 0 : index
      %37 = vector.load %arg9[%c0_26, %c0_27] : memref<160x128xbf16, #tpu.memory_space<vmem>>, vector<160x128xbf16>
      tpu.vector_store %arg9[%c0_26, %c0_27], %36 {strides = array<i32>} : memref<160x128xbf16, #tpu.memory_space<vmem>>, vector<160x128xbf16>,
    } else {
    }
    return
  }
  func.func @transform_0(%arg0: i32, %arg1: i32) -> (i32, i32) {
    %c0_i32 = arith.constant 0 : i32
    return %arg0, %arg1 : i32, i32
  }
  func.func @transform_1(%arg0: i32, %arg1: i32) -> (i32, i32) {
    %c0_i32 = arith.constant 0 : i32
    %c0_i32_0 = arith.constant 0 : i32
    return %arg0, %c0_i32 : i32, i32
  }
  func.func @transform_2(%arg0: i32, %arg1: i32) -> (i32, i32) {
    %c0_i32 = arith.constant 0 : i32
    %c0_i32_0 = arith.constant 0 : i32
    return %arg1, %c0_i32 : i32, i32
  }
  func.func @transform_3(%arg0: i32, %arg1: i32) -> (i32, i32) {
    %c0_i32 = arith.constant 0 : i32
    %c0_i32_0 = arith.constant 0 : i32
    return %arg0, %c0_i32 : i32, i32
  }
  func.func @transform_4(%arg0: i32, %arg1: i32) -> (i32, i32) {
    %c0_i32 = arith.constant 0 : i32
    %c0_i32_0 = arith.constant 0 : i32
    %c0_i32_1 = arith.constant 0 : i32
    return %c0_i32, %c0_i32_0 : i32, i32
  }
  func.func @transform_5(%arg0: i32, %arg1: i32) -> (i32, i32) {
    %c0_i32 = arith.constant 0 : i32
    %c0_i32_0 = arith.constant 0 : i32
    %c0_i32_1 = arith.constant 0 : i32
    return %c0_i32, %c0_i32_0 : i32, i32
  }
  func.func @transform_6(%arg0: i32, %arg1: i32) -> (i32, i32) {
    %c0_i32 = arith.constant 0 : i32
    %c0_i32_0 = arith.constant 0 : i32
    %c0_i32_1 = arith.constant 0 : i32
    return %c0_i32, %c0_i32_0 : i32, i32
  }
  func.func @transform_7(%arg0: i32, %arg1: i32) -> (i32, i32) {
    %c0_i32 = arith.constant 0 : i32
    %c0_i32_0 = arith.constant 0 : i32
    return %arg0, %c0_i32 : i32, i32
  }
}

</mosaic_0001>

<bundles_post_ra>
// kernel: tpu_custom_call.1
= control target key start
LH: loop header
LB: loop body
LE: loop exit
PB: predicated region body
PF: predicated region fallthrough
CT: control target
= control target key end

     0   :  { %s3779_s0 = inlined_call_operand.hbm [shape: bf16[160,1024], index: 0, kind: input, shape index: {}]   ;;  %s3780_s1 = inlined_call_operand.vmem [shape: f32[160,1], index: 1, kind: input, shape index: {}]   ;;  %s3781_s2 = inlined_call_operand.hbm [shape: bf16[1024,128], index: 2, kind: input, shape index: {}]   ;;  %s3782_s3 = inlined_call_operand.vmem [shape: bf16[160,128], index: 3, kind: input, shape index: {}]   ;;  %s3783_s4 = inlined_call_operand.vmem [shape: bf16[128,128], index: 4, kind: input, shape index: {}]   ;;  %s3784_s5 = inlined_call_operand.hbm [shape: bf16[128,128], index: 5, kind: input, shape index: {}]   ;;  %s3785_s6 = inlined_call_operand.vmem [shape: f32[1,128], index: 6, kind: input, shape index: {}]   ;;  %s3786_s7 = inlined_call_operand.hbm [shape: bf16[160,128], index: 7, kind: output, shape index: {}]  }
   0x1   :  { %3795 = sst [smem:[#allocation17_spill]] %s3779_s0 }
   0x2   :  { %3796 = sst [smem:[#allocation18_spill]] %s3784_s5 }
   0x3   :  { %12 = vsyncpa [#allocation4], 0 }
   0x4   :  { %14 = vsyncpa [#allocation4 + $0x1], 0 }
   0x5   :  { %15 = vsyncpa [#allocation7], 0 }
   0x6   :  { %17 = vsyncpa [#allocation7 + $0x1], 0 }
   0x7   :  { %18 = vsyncpa [#allocation5], 0  ;;  %s3209_s24 = smov 0   ;;  %s3211_s25 = smov 0  }
   0x8   :  { %s3213_s26 = smov 0   ;;  %s3215_s27 = smov 0  }
   0x9   :  { %s3217_s28 = smov 0   ;;  %s3219_s29 = smov 0  }
   0xa LB: > { %3797 = sst [smem:[#allocation14_spill]] %s3142_s26  ;;  %s3238_s30 = sadd.s32 4294967295, %s3154_s29   ;;  %s3154_s29 = sphi %s3219_s29, %s24_s29   ;;  %s3150_s28 = sphi %s3217_s28, %s3820_s28   ;;  %s3146_s27 = sphi %s3215_s27, %s3819_s27   ;;  %s3142_s26 = sphi %s3213_s26, %s3815_s26   ;;  %s3138_s25 = sphi %s3211_s25, %s3818_s25   ;;  %s3134_s24 = sphi %s3209_s24, %s3817_s24  }
   0xb   : > { %s45_s8 = sadd.s32 1, %s3142_s26  ;;  %p52_p0 = scmp.ne.s32.totalorder %s3142_s26, %s3138_s25 }
   0xc   : > { %p53_p1 = scmp.eq.s32.totalorder %s3154_s29, 0  ;;  %p58_p2 = scmp.ne.s32.totalorder %s3138_s25, %s3134_s24 }
   0xd   : > { %p3787_p3 = scmp.eq.s32.totalorder %s3238_s30, 0  ;;  %p2230_p5 = scmp.ge.s32.totalorder %s3154_s29, 1 }
   0xe   : > { %p54_p4 = por %p53_p1, %p52_p0  ;;  %p236_p7 = scmp.lt.s32.totalorder %s3154_s29, 3 }
   0xf   : > { %p3249_p6 = por %p3787_p3, %p58_p2  ;;  %s3156_s11 = smov [#allocation8]  }
  0x10   : > { %p3254_p8 = pnand %p2230_p5, %p236_p7  ;;  %s269_s12 = sshll.u32 %s3156_s11, 4  ;;  %s270_s12 = int_to_ptr.vmem [resolvable:$true] %s269_s12 }
  0x11   : > { %s3798_s9 = scalar_select %p3249_p6, 1, 0 }
  0x12   : > { %s3799_s10 = scalar_select %p3254_p8, 1, 0 }
  0x13   : > { %p2743_p9 = pneg %p3254_p8  ;;  %p2755_p10 = scmp.lt.s32.totalorder %s3154_s29, 2 }
  0x14   : > { %s33_s15 = sadd.s32 1, %s3150_s28  ;;  %s3802_s5 = sld [smem:[#allocation18_spill]] }
  0x15   : > { %p3263_p11 = pnand %p2743_p9, %p3787_p3  ;;  %p3267_p12 = pnand %p2755_p10, %p54_p4 }
  0x17   : > { %s3801_s14 = scalar_select %p3267_p12, 1, 0 }
  0x18   : > { %p2980_p0 = pneg %p3263_p11 }
  0x1a   : > { %s2978_s18 = scalar_lea.hbm %s3802_s5, 1024 }
  0x1b   : > { %p2979_p13 = scmp.ne.s32.totalorder %s3802_s5, %s2978_s18  ;;  %p2985_p4 = scmp.lt.u32.totalorder %s2978_s18, %s3802_s5 }
  0x1d   : > { %p2981_p1 = pnand %p2980_p0, %p2979_p13 }
  0x1f   : > { %p2982_p2 = pneg %p2981_p1 }
  0x21   : > { %p2987_p5 = pnand %p2985_p4, %p2982_p2 }
  0x23   : > { %2990 = shalt.err (!%p2987_p5)
}
  0x24   : > { %s2991_s23 = scalar_lea.vmem %s270_s12, 1024  ;;  %p2999_p3 = scmp.lt.s32.totalorder %s270_s12, %s270_s12 }
  0x25   : > { %p2992_p7 = scmp.ne.s32.totalorder %s270_s12, %s2991_s23  ;;  %p3000_p6 = scmp.lt.s32.totalorder %s2991_s23, %s2991_s23 }
  0x27   : > { %p2994_p9 = pnand %p2992_p7, %p2980_p0  ;;  %p3001_p8 = por %p3000_p6, %p2999_p3 }
  0x29   : > { %p2995_p10 = pneg %p2994_p9 }
  0x2b   : > { %p3002_p12 = pnand %p3001_p8, %p2995_p10 }
  0x2d   : > { %3005 = shalt.err (!%p3002_p12)
}
  0x2e   : > { %s3791_s24 = smov 64   ;;  %s3792_s11 = smov 4  }
  0x2f   : > { %2746 = dma.hbm_to_vmem [thread:$0]  (!%p3263_p11), %s3802_s5, 1024, %s270_s12, [#allocation7], %s3791_s24, %s3791_s24, %s3792_s11  }
  0x30   : > { %p34_p3 = scmp.ge.s32.totalorder %s33_s15, 2  ;;  %s3292_s18 = sand.u32 1, %s3142_s26  }
  0x31   : > { %s2368_s19 = sshll.u32 %s3150_s28, 8  ;;  %s2729_s20 = smul.u32 320, %s3292_s18 }
  0x32   : > { %s3822_s15 = smov (%p34_p3, %s33_s15), 0  ;;  %s3804_s0 = sld [smem:[#allocation17_spill]] }
  0x33   : > { %3803 = sst [smem:[#allocation15_spill]] %s3822_s15  ;;  %s41_s13 = ssub.s32 %s3150_s28, %s3822_s15 }
  0x34   : > { %p43_p6 = scmp.eq.s32.totalorder %s41_s13, 0  ;;  %s290_s12 = scalar_lea.vmem [#allocation3], %s2729_s20 }
  0x35   : > { %s300_s16 = sshll.u32 %s290_s12, 4  ;;  %s287_s11 = scalar_lea.sflag [#allocation4], %s3292_s18  ;;  %s3310_s16 = int_to_ptr.vmem [resolvable:$true] %s300_s16 }
  0x36   : > { %s3308_s17 = scalar_select %p43_p6, %s3142_s26, %s45_s8  }
  0x37   : > { %p3806_p11 = scmp.ne.s32.totalorder %s3801_s14, 0 }
  0x38   : > { %s3303_s23 = scalar_lea.hbm %s3804_s0, %s2368_s19  ;;  %3805 = sst [smem:[#allocation16_spill]] %s3308_s17 }
  0x39   : > { %s3006_s5 = scalar_lea.hbm %s3303_s23, 5120  ;;  %p3008_p12 = pneg %p3806_p11 }
  0x3a   : > { %p3007_p8 = scmp.ne.s32.totalorder %s3303_s23, %s3006_s5  ;;  %s3011_s20 = scalar_lea.hbm %s3804_s0, 10240 }
  0x3b   : > { %p3012_p1 = scmp.lt.u32.totalorder %s3303_s23, %s3804_s0  ;;  %p3013_p2 = scmp.lt.u32.totalorder %s3011_s20, %s3006_s5 }
  0x3c   : > { %p3009_p13 = pnand %p3008_p12, %p3007_p8  ;;  %p3015_p5 = scmp.lt.u32.totalorder %s3006_s5, %s3303_s23 }
  0x3d   : > { %p3014_p4 = por %p3013_p2, %p3012_p1 }
  0x3e   : > { %p3010_p0 = pneg %p3009_p13 }
  0x3f   : > { %p3016_p7 = por %p3015_p5, %p3014_p4 }
  0x41   : > { %p3017_p9 = pnand %p3016_p7, %p3010_p0 }
  0x43   : > { %3020 = shalt.err (!%p3017_p9)
}
  0x44   : > { %s3021_s8 = scalar_lea.vmem %s3310_s16, 5120  ;;  %s3159_s12 = smov [#allocation3]  }
  0x45   : > { %p3022_p10 = scmp.ne.s32.totalorder %s3310_s16, %s3021_s8  ;;  %s3026_s19 = sshll.u32 %s3159_s12, 4  ;;  %s3027_s19 = int_to_ptr.vmem [resolvable:$false] %s3026_s19 }
  0x46   : > { %s3028_s13 = scalar_lea.vmem %s3027_s19, 10240  ;;  %p3029_p8 = scmp.lt.s32.totalorder %s3310_s16, %s3027_s19 }
  0x47   : > { %p3024_p3 = pnand %p3022_p10, %p3008_p12  ;;  %p3030_p13 = scmp.lt.s32.totalorder %s3028_s13, %s3021_s8 }
  0x49   : > { %p3025_p6 = pneg %p3024_p3  ;;  %p3031_p1 = por %p3030_p13, %p3029_p8 }
  0x4b   : > { %p3032_p2 = pnand %p3031_p1, %p3025_p6 }
  0x4d   : > { %3035 = shalt.err (!%p3032_p2)
}
  0x4e   : > { %s3160_s5 = smov 512   ;;  %s3161_s20 = smov 256  }
  0x4f   : > { %s3162_s21 = smov 16   ;;  %s2237_s22 = sshll.u32 %s3292_s18, 8 }
  0x50   : > { %2750 = dma.hbm_to_vmem [thread:$0]  (!%p3806_p11), %s3303_s23, 5120, %s3310_s16, %s287_s11, %s3160_s5, %s3161_s20, %s3162_s21  }
  0x51   : > { %s2369_s12 = sshll.u32 %s3150_s28, 12  ;;  %s314_s24 = scalar_lea.vmem [#allocation6], %s2237_s22 }
  0x52   : > { %s3346_s13 = scalar_lea.hbm %s3781_s2, %s2369_s12  ;;  %s321_s0 = sshll.u32 %s314_s24, 4  ;;  %s3348_s0 = int_to_ptr.vmem [resolvable:$true] %s321_s0 }
  0x53   : > { %s3807_s15 = sand.u32 1, %s3154_s29   ;;  %s3036_s26 = scalar_lea.hbm %s3346_s13, 4096 }
  0x54   : > { %s3352_s17 = scalar_lea.sflag [#allocation7], %s3807_s15  ;;  %p3037_p0 = scmp.ne.s32.totalorder %s3346_s13, %s3036_s26 }
  0x55   : > { %s3041_s23 = scalar_lea.hbm %s3781_s2, 8192  ;;  %p3042_p7 = scmp.lt.u32.totalorder %s3346_s13, %s3781_s2 }
  0x56   : > { %p3039_p4 = pnand %p3037_p0, %p3008_p12  ;;  %p3043_p9 = scmp.lt.u32.totalorder %s3041_s23, %s3036_s26 }
  0x57   : > { %p3045_p3 = scmp.lt.u32.totalorder %s3036_s26, %s3346_s13 }
  0x58   : > { %p3040_p5 = pneg %p3039_p4  ;;  %p3044_p10 = por %p3043_p9, %p3042_p7 }
  0x5a   : > { %p3046_p6 = por %p3045_p3, %p3044_p10 }
  0x5c   : > { %p3047_p8 = pnand %p3046_p6, %p3040_p5 }
  0x5e   : > { %3050 = shalt.err (!%p3047_p8)
}
  0x5f   : > { %s3051_s15 = scalar_lea.vmem %s3348_s0, 4096  ;;  %s3163_s24 = smov [#allocation6]  }
  0x60   : > { %p3052_p13 = scmp.ne.s32.totalorder %s3348_s0, %s3051_s15  ;;  %s3056_s20 = sshll.u32 %s3163_s24, 4  ;;  %s3057_s20 = int_to_ptr.vmem [resolvable:$false] %s3056_s20 }
  0x61   : > { %s3058_s21 = scalar_lea.vmem %s3057_s20, 8192  ;;  %p3059_p0 = scmp.lt.s32.totalorder %s3348_s0, %s3057_s20 }
  0x62   : > { %p3054_p1 = pnand %p3052_p13, %p3008_p12  ;;  %p3060_p4 = scmp.lt.s32.totalorder %s3058_s21, %s3051_s15 }
  0x64   : > { %p3055_p2 = pneg %p3054_p1  ;;  %p3061_p7 = por %p3060_p4, %p3059_p0 }
  0x66   : > { %p3062_p9 = pnand %p3061_p7, %p3055_p2 }
  0x68   : > { %3065 = shalt.err (!%p3062_p9)
}
  0x69   : > { %s3808_s26 = smov 4   ;;  %s3809_s22 = smov 64  }
  0x6a   : > { %2753 = dma.hbm_to_vmem [thread:$0]  (!%p3806_p11), %s3346_s13, 4096, %s3348_s0, %s3352_s17, %s3809_s22, %s3809_s22, %s3808_s26  }
  0x6b   : > { %p3810_p12 = scmp.ne.s32.totalorder %s3799_s10, 0 }
  0x6c   : > { %s335_s12 = sand.u32 (!%p3810_p12), 1, %s3138_s25   ;;  %p3811_p5 = scmp.ne.s32.totalorder (!%p3810_p12), %s3798_s9, 0 }
  0x6d   : > { %333 = sbr.rel (%p3810_p12) target bundleno = 1021 (0x3fd), region = 48  ;;  %s336_s19 = scalar_lea.sflag (!%p3810_p12), [#allocation4], %s335_s12 }
  0x6e   : > { %s2730_s8 = smul.u32 (!%p3810_p12), 320, %s335_s12 }
  0x70   : > { %s3384_s11 = scalar_lea.vmem (!%p3810_p12), [#allocation3], %s2730_s8 }
  0x74   : > { %3117 = dma.done.wait (%p3811_p5), %s336_s19, 5120  }
  0x75   : > { %3119 = vsyncadd (%p3811_p5), %s336_s19, 4294962176  ;;  %s344_s14 = sand.u32 1, %s3238_s30   ;;  %s2241_s18 = sshll.u32 %s335_s12, 8 }
  0x76   : > { %s345_s0 = scalar_lea.sflag [#allocation7], %s344_s14  ;;  %s3391_s17 = scalar_lea.vmem [#allocation6], %s2241_s18 }
  0x77   : > { %3121 = dma.done.wait (%p3811_p5), %s345_s0, 4096  }
  0x78   : > { %3123 = vsyncadd (%p3811_p5), %s345_s0, 4294963200  ;;  %p3812_p11 = scmp.eq.s32.totalorder %s3238_s30, 0 }
  0x7a   : > { %3125 = dma.done.wait (%p3812_p11), [#allocation7], 1024   ;;  %p3813_p10 = pmov %p3812_p11 }
  0x7b   : > { %p2243_p3 = scmp.ne.s32.totalorder %s3146_s27, 0 }
  0x7c   : > { %3127 = vsyncadd (%p3813_p10), [#allocation7], 4294966272  ;;  %v3164_v0 = vmov (!%p2243_p3), 0.0  }
  0x7d   : > { %413 = sbr.rel (%p2243_p3) target bundleno = 135 (0x87), region = 64  ;;  %414 = vst [vmem:[#allocation2] sm:$0xff] (!%p2243_p3), %v3164_v0  ;;  %415 = vst [vmem:[#allocation2 + $0x8] sm:$0xff] (!%p2243_p3), %v3164_v0 }
  0x7e   : > { %416 = vst [vmem:[#allocation2 + $0x10] sm:$0xff] (!%p2243_p3), %v3164_v0  ;;  %417 = vst [vmem:[#allocation2 + $0x18] sm:$0xff] (!%p2243_p3), %v3164_v0 }
  0x7f   : > { %418 = vst [vmem:[#allocation2 + $0x20] sm:$0xff] (!%p2243_p3), %v3164_v0  ;;  %419 = vst [vmem:[#allocation2 + $0x28] sm:$0xff] (!%p2243_p3), %v3164_v0 }
  0x80   : > { %420 = vst [vmem:[#allocation2 + $0x30] sm:$0xff] (!%p2243_p3), %v3164_v0  ;;  %421 = vst [vmem:[#allocation2 + $0x38] sm:$0xff] (!%p2243_p3), %v3164_v0 }
  0x81   : > { %422 = vst [vmem:[#allocation2 + $0x40] sm:$0xff] (!%p2243_p3), %v3164_v0  ;;  %423 = vst [vmem:[#allocation2 + $0x48] sm:$0xff] (!%p2243_p3), %v3164_v0 }
  0x82   : > { %424 = vst [vmem:[#allocation2 + $0x50] sm:$0xff] (!%p2243_p3), %v3164_v0  ;;  %425 = vst [vmem:[#allocation2 + $0x58] sm:$0xff] (!%p2243_p3), %v3164_v0 }
  0x83   : > { %426 = vst [vmem:[#allocation2 + $0x60] sm:$0xff] (!%p2243_p3), %v3164_v0  ;;  %427 = vst [vmem:[#allocation2 + $0x68] sm:$0xff] (!%p2243_p3), %v3164_v0 }
  0x84   : > { %428 = vst [vmem:[#allocation2 + $0x70] sm:$0xff] %v3164_v0  ;;  %429 = vst [vmem:[#allocation2 + $0x78] sm:$0xff] %v3164_v0 }
  0x85   : > { %430 = vst [vmem:[#allocation2 + $0x80] sm:$0xff] %v3164_v0  ;;  %431 = vst [vmem:[#allocation2 + $0x88] sm:$0xff] %v3164_v0 }
  0x86   : > { %432 = vst [vmem:[#allocation2 + $0x90] sm:$0xff] %v3164_v0  ;;  %433 = vst [vmem:[#allocation2 + $0x98] sm:$0xff] %v3164_v0 }
  0x87 PF: > { %v2818_v1 = vld [vmem:[%s3391_s17 + $0x40] sm:$0xff]   ;;  %v2822_v5 = vld [vmem:[%s3391_s17 + $0x48] sm:$0xff]   ;;  %v2826_v9 = vld [vmem:[%s3391_s17 + $0x50] sm:$0xff]   ;;  %p2316_p6 = scmp.ne.s32.totalorder %s3146_s27, 1 }
  0x88   : > { %v2819_v2 = vld [vmem:[%s3391_s17 + $0xc0] sm:$0xff]   ;;  %2449 = vmatprep.subr.bf16.mxu0 %v2818_v1  ;;  %v2823_v6 = vld [vmem:[%s3391_s17 + $0xc8] sm:$0xff]   ;;  %v2827_v10 = vld [vmem:[%s3391_s17 + $0xd0] sm:$0xff]  }
  0x89   : > { %v2820_v3 = vld [vmem:[%s3391_s17] sm:$0xff]   ;;  %2525 = vmatprep.subr.bf16.mxu1 %v2819_v2  ;;  %v2824_v7 = vld [vmem:[%s3391_s17 + $0x8] sm:$0xff]   ;;  %v2828_v11 = vld [vmem:[%s3391_s17 + $0x10] sm:$0xff]  }
  0x8a   : > { %v2821_v4 = vld [vmem:[%s3391_s17 + $0x80] sm:$0xff]   ;;  %2450 = vmatpush3.bf16.msra.mxu0 %v2820_v3  ;;  %v2825_v8 = vld [vmem:[%s3391_s17 + $0x88] sm:$0xff]   ;;  %v2829_v12 = vld [vmem:[%s3391_s17 + $0x90] sm:$0xff]  }
  0x8b   : > { %2526 = vmatpush3.bf16.msra.mxu1 %v2821_v4  ;;  %2451 = vmatprep.subr.bf16.mxu0 %v2822_v5  ;;  %v2830_v13 = vld [vmem:[%s3391_s17 + $0x58] sm:$0xff]   ;;  %v2834_v17 = vld [vmem:[%s3391_s17 + $0x60] sm:$0xff]   ;;  %v2838_v21 = vld [vmem:[%s3391_s17 + $0x68] sm:$0xff]  }
  0x8c   : > { %2527 = vmatprep.subr.bf16.mxu1 %v2823_v6  ;;  %v2831_v14 = vld [vmem:[%s3391_s17 + $0xd8] sm:$0xff]   ;;  %v2835_v18 = vld [vmem:[%s3391_s17 + $0xe0] sm:$0xff]   ;;  %v2839_v22 = vld [vmem:[%s3391_s17 + $0xe8] sm:$0xff]  }
  0x8d   : > { %v2832_v15 = vld [vmem:[%s3391_s17 + $0x18] sm:$0xff]   ;;  %v2836_v19 = vld [vmem:[%s3391_s17 + $0x20] sm:$0xff]   ;;  %v2840_v23 = vld [vmem:[%s3391_s17 + $0x28] sm:$0xff]  }
  0x8e   : > { %2452 = vmatpush3.bf16.msra.mxu0 %v2824_v7  ;;  %v2833_v16 = vld [vmem:[%s3391_s17 + $0x98] sm:$0xff]   ;;  %v2837_v20 = vld [vmem:[%s3391_s17 + $0xa0] sm:$0xff]   ;;  %v2841_v24 = vld [vmem:[%s3391_s17 + $0xa8] sm:$0xff]  }
  0x8f   : > { %2528 = vmatpush3.bf16.msra.mxu1 %v2825_v8  ;;  %2453 = vmatprep.subr.bf16.mxu0 %v2826_v9  ;;  %v2842_v25 = vld [vmem:[%s3391_s17 + $0x70] sm:$0xff]   ;;  %v2846_v29 = vld [vmem:[%s3391_s17 + $0x78] sm:$0xff]  }
  0x90   : > { %2529 = vmatprep.subr.bf16.mxu1 %v2827_v10  ;;  %v2843_v26 = vld [vmem:[%s3391_s17 + $0xf0] sm:$0xff]   ;;  %v2847_v30 = vld [vmem:[%s3391_s17 + $0xf8] sm:$0xff]  }
  0x91   : > { %v2844_v27 = vld [vmem:[%s3391_s17 + $0x30] sm:$0xff]   ;;  %v2848_v31 = vld [vmem:[%s3391_s17 + $0x38] sm:$0xff]  }
  0x92   : > { %2454 = vmatpush3.bf16.msra.mxu0 %v2828_v11  ;;  %v2845_v28 = vld [vmem:[%s3391_s17 + $0xb0] sm:$0xff]   ;;  %v2849_v32 = vld [vmem:[%s3391_s17 + $0xb8] sm:$0xff]  }
  0x93   : > { %2530 = vmatpush3.bf16.msra.mxu1 %v2829_v12  ;;  %2455 = vmatprep.subr.bf16.mxu0 %v2830_v13  ;;  %v2850_v33 = vld [vmem:[%s3384_s11] ss:$16 sps:$4 sm:$0xff]   ;;  %v2852_v34 = vld [vmem:[%s3384_s11 + $0x4] ss:$16 sps:$4 sm:$0xff]   ;;  %v2853_v35 = vld [vmem:[%s3384_s11 + $0x8] ss:$16 sps:$4 sm:$0xff]  }
  0x94   : > { %2531 = vmatprep.subr.bf16.mxu1 %v2831_v14  ;;  %v2855_v36 = vld [vmem:[%s3384_s11 + $0xc] ss:$16 sps:$4 sm:$0xff]   ;;  %982 = vmatprep.mubr.bf16.mxu0 %v2852_v34  ;;  %v2856_v37 = vld [vmem:[%s3384_s11 + $0x24] ss:$16 sps:$4 sm:$0xff]   ;;  %v2860_v39 = vld [vmem:[%s3384_s11 + $0x20] ss:$16 sps:$4 sm:$0xff]  }
  0x95   : > { %1095 = vmatprep.mubr.bf16.mxu1 %v2855_v36  ;;  %v2858_v38 = vld [vmem:[%s3384_s11 + $0x2c] ss:$16 sps:$4 sm:$0xff]   ;;  %v2861_v40 = vld [vmem:[%s3384_s11 + $0x28] ss:$16 sps:$4 sm:$0xff]   ;;  %v2862_v41 = vld [vmem:[%s3384_s11 + $0x44] ss:$16 sps:$4 sm:$0xff]  }
  0x96   : > { %2456 = vmatpush3.bf16.msra.mxu0 %v2832_v15  ;;  %v2864_v42 = vld [vmem:[%s3384_s11 + $0x4c] ss:$16 sps:$4 sm:$0xff]   ;;  %v2866_v43 = vld [vmem:[%s3384_s11 + $0x40] ss:$16 sps:$4 sm:$0xff]   ;;  %v2867_v44 = vld [vmem:[%s3384_s11 + $0x48] ss:$16 sps:$4 sm:$0xff]  }
  0x97   : > { %2532 = vmatpush3.bf16.msra.mxu1 %v2833_v16  ;;  %2457 = vmatprep.subr.bf16.mxu0 %v2834_v17  ;;  %v2868_v45 = vld [vmem:[%s3384_s11 + $0x64] ss:$16 sps:$4 sm:$0xff]   ;;  %v2870_v46 = vld [vmem:[%s3384_s11 + $0x6c] ss:$16 sps:$4 sm:$0xff]   ;;  %v2872_v47 = vld [vmem:[%s3384_s11 + $0x60] ss:$16 sps:$4 sm:$0xff]  }
  0x98   : > { %2533 = vmatprep.subr.bf16.mxu1 %v2835_v18  ;;  %v2873_v48 = vld [vmem:[%s3384_s11 + $0x68] ss:$16 sps:$4 sm:$0xff]   ;;  %v2874_v49 = vld [vmem:[%s3384_s11 + $0x84] ss:$16 sps:$4 sm:$0xff]   ;;  %v2876_v50 = vld [vmem:[%s3384_s11 + $0x8c] ss:$16 sps:$4 sm:$0xff]  }
  0x99   : > { %v2878_v51 = vld [vmem:[%s3384_s11 + $0x80] ss:$16 sps:$4 sm:$0xff]   ;;  %v2879_v52 = vld [vmem:[%s3384_s11 + $0x88] ss:$16 sps:$4 sm:$0xff]   ;;  %v2880_v53 = vld [vmem:[%s3384_s11 + $0xa4] ss:$16 sps:$4 sm:$0xff]  }
  0x9a   : > { %2458 = vmatpush3.bf16.msra.mxu0 %v2836_v19  ;;  %v2882_v54 = vld [vmem:[%s3384_s11 + $0xac] ss:$16 sps:$4 sm:$0xff]   ;;  %v2884_v55 = vld [vmem:[%s3384_s11 + $0xa0] ss:$16 sps:$4 sm:$0xff]   ;;  %v2885_v56 = vld [vmem:[%s3384_s11 + $0xa8] ss:$16 sps:$4 sm:$0xff]  }
  0x9b   : > { %2534 = vmatpush3.bf16.msra.mxu1 %v2837_v20  ;;  %2459 = vmatprep.subr.bf16.mxu0 %v2838_v21  ;;  %v2886_v57 = vld [vmem:[%s3384_s11 + $0xc4] ss:$16 sps:$4 sm:$0xff]   ;;  %v2888_v58 = vld [vmem:[%s3384_s11 + $0xcc] ss:$16 sps:$4 sm:$0xff]   ;;  %v2890_v59 = vld [vmem:[%s3384_s11 + $0xc0] ss:$16 sps:$4 sm:$0xff]  }
  0x9c   : > { %2535 = vmatprep.subr.bf16.mxu1 %v2839_v22  ;;  %v2891_v60 = vld [vmem:[%s3384_s11 + $0xc8] ss:$16 sps:$4 sm:$0xff]   ;;  %v2892_v61 = vld [vmem:[%s3384_s11 + $0xe4] ss:$16 sps:$4 sm:$0xff]   ;;  %v2894_v62 = vld [vmem:[%s3384_s11 + $0xec] ss:$16 sps:$4 sm:$0xff]  }
  0x9d   : > { %v2896_v63 = vld [vmem:[%s3384_s11 + $0xe0] ss:$16 sps:$4 sm:$0xff]   ;;  %v2897_v0 = vld [vmem:[%s3384_s11 + $0xe8] ss:$16 sps:$4 sm:$0xff]   ;;  %v2898_v1 = vld [vmem:[%s3384_s11 + $0x104] ss:$16 sps:$4 sm:$0xff]  }
  0x9e   : > { %2460 = vmatpush3.bf16.msra.mxu0 %v2840_v23  ;;  %v2900_v2 = vld [vmem:[%s3384_s11 + $0x10c] ss:$16 sps:$4 sm:$0xff]   ;;  %v2902_v3 = vld [vmem:[%s3384_s11 + $0x100] ss:$16 sps:$4 sm:$0xff]   ;;  %v2903_v4 = vld [vmem:[%s3384_s11 + $0x108] ss:$16 sps:$4 sm:$0xff]  }
  0x9f   : > { %2536 = vmatpush3.bf16.msra.mxu1 %v2841_v24  ;;  %2461 = vmatprep.subr.bf16.mxu0 %v2842_v25  ;;  %v2904_v5 = vld [vmem:[%s3384_s11 + $0x124] ss:$16 sps:$4 sm:$0xff]   ;;  %v2906_v6 = vld [vmem:[%s3384_s11 + $0x12c] ss:$16 sps:$4 sm:$0xff]   ;;  %v2908_v7 = vld [vmem:[%s3384_s11 + $0x120] ss:$16 sps:$4 sm:$0xff]  }
  0xa0   : > { %2537 = vmatprep.subr.bf16.mxu1 %v2843_v26  ;;  %v2909_v8 = vld [vmem:[%s3384_s11 + $0x128] ss:$16 sps:$4 sm:$0xff]   ;;  %v434_v18 = vld [vmem:[#allocation2] sm:$0xff]  ;;  %v436_v36 = vld [vmem:[#allocation2 + $0x10] sm:$0xff] }
  0xa1   : > { %v435_v23 = vld [vmem:[#allocation2 + $0x8] sm:$0xff] }
  0xa2   : > { %2462 = vmatpush3.bf16.msra.mxu0 %v2844_v27 }
  0xa3   : > { %2538 = vmatpush3.bf16.msra.mxu1 %v2845_v28  ;;  %2463 = vmatprep.subr.bf16.mxu0 %v2846_v29 }
  0xa4   : > { %2539 = vmatprep.subr.bf16.mxu1 %v2847_v30 }
  0xa6   : > { %2464 = vmatpush3.bf16.msra.mxu0 %v2848_v31 }
  0xa7   : > { %2540 = vmatpush3.bf16.msra.mxu1 %v2849_v32 }
  0xa9   : > { %983 = vmatmul.mubr.bf16.vlgmr.msra.gmra.mrb[0].mxu0 %v2850_v33 }
  0xaa   : > { %1096 = vmatmul.mubr.bf16.vlgmr.msra.gmra.mrb[0].mxu1 %v2853_v35  ;;  %990 = vmatprep.mubr.bf16.mxu0 %v2856_v37 }
  0xab   : > { %1103 = vmatprep.mubr.bf16.mxu1 %v2858_v38 }
  0xb1   : > { %991 = vmatmul.mubr.bf16.gmra.mrb[4].mxu0 %v2860_v39 }
  0xb2   : > { %1104 = vmatmul.mubr.bf16.gmra.mrb[4].mxu1 %v2861_v40  ;;  %998 = vmatprep.mubr.bf16.mxu0 %v2862_v41  ;;  %v437_v41 = vld [vmem:[#allocation2 + $0x18] sm:$0xff] }
  0xb3   : > { %1111 = vmatprep.mubr.bf16.mxu1 %v2864_v42 }
  0xb9   : > { %999 = vmatmul.mubr.bf16.gmra.mrb[8].mxu0 %v2866_v43 }
  0xba   : > { %1112 = vmatmul.mubr.bf16.gmra.mrb[8].mxu1 %v2867_v44  ;;  %1006 = vmatprep.mubr.bf16.mxu0 %v2868_v45 }
  0xbb   : > { %1119 = vmatprep.mubr.bf16.mxu1 %v2870_v46 }
  0xc1   : > { %1007 = vmatmul.mubr.bf16.gmra.mrb[12].mxu0 %v2872_v47 }
  0xc2   : > { %1120 = vmatmul.mubr.bf16.gmra.mrb[12].mxu1 %v2873_v48  ;;  %1014 = vmatprep.mubr.bf16.mxu0 %v2874_v49 }
  0xc3   : > { %1127 = vmatprep.mubr.bf16.mxu1 %v2876_v50 }
  0xc9   : > { %1015 = vmatmul.mubr.bf16.gmra.mrb[16].mxu0 %v2878_v51 }
  0xca   : > { %1128 = vmatmul.mubr.bf16.gmra.mrb[16].mxu1 %v2879_v52  ;;  %1022 = vmatprep.mubr.bf16.mxu0 %v2880_v53 }
  0xcb   : > { %1135 = vmatprep.mubr.bf16.mxu1 %v2882_v54  ;;  %v438_v54 = vld [vmem:[#allocation2 + $0x20] sm:$0xff] }
  0xd1   : > { %1023 = vmatmul.mubr.bf16.gmra.mrb[20].mxu0 %v2884_v55 }
  0xd2   : > { %1136 = vmatmul.mubr.bf16.gmra.mrb[20].mxu1 %v2885_v56  ;;  %1030 = vmatprep.mubr.bf16.mxu0 %v2886_v57 }
  0xd3   : > { %1143 = vmatprep.mubr.bf16.mxu1 %v2888_v58 }
  0xd9   : > { %1031 = vmatmul.mubr.bf16.gmra.mrb[24].mxu0 %v2890_v59  ;;  %v439_v59 = vld [vmem:[#allocation2 + $0x28] sm:$0xff] }
  0xda   : > { %1144 = vmatmul.mubr.bf16.gmra.mrb[24].mxu1 %v2891_v60  ;;  %1038 = vmatprep.mubr.bf16.mxu0 %v2892_v61 }
  0xdb   : > { %1151 = vmatprep.mubr.bf16.mxu1 %v2894_v62 }
  0xe1   : > { %1039 = vmatmul.mubr.bf16.gmra.mrb[28].mxu0 %v2896_v63 }
  0xe2   : > { %1152 = vmatmul.mubr.bf16.gmra.mrb[28].mxu1 %v2897_v0  ;;  %1046 = vmatprep.mubr.bf16.mxu0 %v2898_v1 }
  0xe3   : > { %1159 = vmatprep.mubr.bf16.mxu1 %v2900_v2 }
  0xe9   : > { %1047 = vmatmul.mubr.bf16.gmra.mrb[32].mxu0 %v2902_v3 }
  0xea   : > { %1160 = vmatmul.mubr.bf16.gmra.mrb[32].mxu1 %v2903_v4  ;;  %1054 = vmatprep.mubr.bf16.mxu0 %v2904_v5 }
  0xeb   : > { %1167 = vmatprep.mubr.bf16.mxu1 %v2906_v6 }
  0xf1   : > { %1055 = vmatmul.mubr.bf16.gmra.mrb[36].mxu0 %v2908_v7 }
  0xf2   : > { %1168 = vmatmul.mubr.bf16.gmra.mrb[36].mxu1 %v2909_v8  ;;  %v440_v8 = vld [vmem:[#allocation2 + $0x30] sm:$0xff] }
 0x17c   : > { %v2465_v9 = vpop.f32.mrb[0].mxu0 }
 0x17d   : > { %v2541_v10 = vpop.f32.mrb[0].mxu1  ;;  %v2466_v11 = vpop.f32.mrb[1].mxu0 }
 0x17e   : > { %v2467_v12 = vadd.f32 %v2466_v11, %v2465_v9  ;;  %v2542_v13 = vpop.f32.mrb[1].mxu1  ;;  %v2468_v14 = vpop.f32.mrb[2].mxu0 }
 0x17f   : > { %v2543_v15 = vadd.f32 %v2542_v13, %v2541_v10  ;;  %v2544_v16 = vpop.f32.mrb[2].mxu1  ;;  %v2469_v17 = vpop.f32.mrb[3].mxu0  ;;  %v441_v13 = vld [vmem:[#allocation2 + $0x38] sm:$0xff] }
 0x180   : > { %v2470_v19 = vadd.f32 %v2469_v17, %v2468_v14  ;;  %v2545_v20 = vpop.f32.mrb[3].mxu1 }
 0x181   : > { %v1098_v21 = vadd.f32 %v2543_v15, %v2467_v12  ;;  %v2546_v22 = vadd.f32 %v2545_v20, %v2544_v16 }
 0x183   : > { %v1176_v24 = vadd.f32 %v1098_v21, %v434_v18  ;;  %v1101_v25 = vadd.f32 %v2546_v22, %v2470_v19 }
 0x184   : > { %v2471_v26 = vpop.f32.mrb[4].mxu0 }
 0x185   : > { %1196 = vst [vmem:[#allocation2] sm:$0xff] %v1176_v24  ;;  %v1177_v27 = vadd.f32 %v1101_v25, %v435_v23  ;;  %v2547_v28 = vpop.f32.mrb[4].mxu1  ;;  %v2472_v29 = vpop.f32.mrb[5].mxu0 }
 0x186   : > { %v2473_v30 = vadd.f32 %v2472_v29, %v2471_v26  ;;  %v2548_v31 = vpop.f32.mrb[5].mxu1  ;;  %v2474_v32 = vpop.f32.mrb[6].mxu0  ;;  %v442_v26 = vld [vmem:[#allocation2 + $0x40] sm:$0xff] }
 0x187   : > { %1197 = vst [vmem:[#allocation2 + $0x8] sm:$0xff] %v1177_v27  ;;  %v2549_v33 = vadd.f32 %v2548_v31, %v2547_v28  ;;  %v2550_v34 = vpop.f32.mrb[6].mxu1  ;;  %v2475_v35 = vpop.f32.mrb[7].mxu0  ;;  %v443_v31 = vld [vmem:[#allocation2 + $0x48] sm:$0xff] }
 0x188   : > { %v2476_v37 = vadd.f32 %v2475_v35, %v2474_v32  ;;  %v2551_v38 = vpop.f32.mrb[7].mxu1 }
 0x189   : > { %v1106_v39 = vadd.f32 %v2549_v33, %v2473_v30  ;;  %v2552_v40 = vadd.f32 %v2551_v38, %v2550_v34 }
 0x18b   : > { %v1178_v42 = vadd.f32 %v1106_v39, %v436_v36  ;;  %v1109_v43 = vadd.f32 %v2552_v40, %v2476_v37 }
 0x18c   : > { %v2477_v44 = vpop.f32.mrb[8].mxu0 }
 0x18d   : > { %1198 = vst [vmem:[#allocation2 + $0x10] sm:$0xff] %v1178_v42  ;;  %v1179_v45 = vadd.f32 %v1109_v43, %v437_v41  ;;  %v2553_v46 = vpop.f32.mrb[8].mxu1  ;;  %v2478_v47 = vpop.f32.mrb[9].mxu0 }
 0x18e   : > { %v2479_v48 = vadd.f32 %v2478_v47, %v2477_v44  ;;  %v2554_v49 = vpop.f32.mrb[9].mxu1  ;;  %v2480_v50 = vpop.f32.mrb[10].mxu0  ;;  %v444_v44 = vld [vmem:[#allocation2 + $0x50] sm:$0xff] }
 0x18f   : > { %1199 = vst [vmem:[#allocation2 + $0x18] sm:$0xff] %v1179_v45  ;;  %v2555_v51 = vadd.f32 %v2554_v49, %v2553_v46  ;;  %v2556_v52 = vpop.f32.mrb[10].mxu1  ;;  %v2481_v53 = vpop.f32.mrb[11].mxu0  ;;  %v445_v49 = vld [vmem:[#allocation2 + $0x58] sm:$0xff] }
 0x190   : > { %v2482_v55 = vadd.f32 %v2481_v53, %v2480_v50  ;;  %v2557_v56 = vpop.f32.mrb[11].mxu1 }
 0x191   : > { %v1114_v57 = vadd.f32 %v2555_v51, %v2479_v48  ;;  %v2558_v58 = vadd.f32 %v2557_v56, %v2556_v52 }
 0x193   : > { %v1180_v60 = vadd.f32 %v1114_v57, %v438_v54  ;;  %v1117_v61 = vadd.f32 %v2558_v58, %v2482_v55 }
 0x194   : > { %v2483_v62 = vpop.f32.mrb[12].mxu0 }
 0x195   : > { %1200 = vst [vmem:[#allocation2 + $0x20] sm:$0xff] %v1180_v60  ;;  %v1181_v63 = vadd.f32 %v1117_v61, %v439_v59  ;;  %v2559_v0 = vpop.f32.mrb[12].mxu1  ;;  %v2484_v1 = vpop.f32.mrb[13].mxu0 }
 0x196   : > { %v2485_v2 = vadd.f32 %v2484_v1, %v2483_v62  ;;  %v2560_v3 = vpop.f32.mrb[13].mxu1  ;;  %v2486_v4 = vpop.f32.mrb[14].mxu0  ;;  %v446_v62 = vld [vmem:[#allocation2 + $0x60] sm:$0xff] }
 0x197   : > { %1201 = vst [vmem:[#allocation2 + $0x28] sm:$0xff] %v1181_v63  ;;  %v2561_v5 = vadd.f32 %v2560_v3, %v2559_v0  ;;  %v2562_v6 = vpop.f32.mrb[14].mxu1  ;;  %v2487_v7 = vpop.f32.mrb[15].mxu0  ;;  %v447_v3 = vld [vmem:[#allocation2 + $0x68] sm:$0xff] }
 0x198   : > { %v2488_v9 = vadd.f32 %v2487_v7, %v2486_v4  ;;  %v2563_v10 = vpop.f32.mrb[15].mxu1 }
 0x199   : > { %v1122_v11 = vadd.f32 %v2561_v5, %v2485_v2  ;;  %v2564_v12 = vadd.f32 %v2563_v10, %v2562_v6 }
 0x19b   : > { %v1182_v14 = vadd.f32 %v1122_v11, %v440_v8  ;;  %v1125_v15 = vadd.f32 %v2564_v12, %v2488_v9 }
 0x19c   : > { %v2489_v16 = vpop.f32.mrb[16].mxu0 }
 0x19d   : > { %1202 = vst [vmem:[#allocation2 + $0x30] sm:$0xff] %v1182_v14  ;;  %v1183_v17 = vadd.f32 %v1125_v15, %v441_v13  ;;  %v2565_v18 = vpop.f32.mrb[16].mxu1  ;;  %v2490_v19 = vpop.f32.mrb[17].mxu0 }
 0x19e   : > { %v2491_v20 = vadd.f32 %v2490_v19, %v2489_v16  ;;  %v2566_v21 = vpop.f32.mrb[17].mxu1  ;;  %v2492_v22 = vpop.f32.mrb[18].mxu0  ;;  %v448_v16 = vld [vmem:[#allocation2 + $0x70] sm:$0xff] }
 0x19f   : > { %1203 = vst [vmem:[#allocation2 + $0x38] sm:$0xff] %v1183_v17  ;;  %v2567_v23 = vadd.f32 %v2566_v21, %v2565_v18  ;;  %v2568_v24 = vpop.f32.mrb[18].mxu1  ;;  %v2493_v25 = vpop.f32.mrb[19].mxu0  ;;  %v449_v21 = vld [vmem:[#allocation2 + $0x78] sm:$0xff] }
 0x1a0   : > { %v2494_v27 = vadd.f32 %v2493_v25, %v2492_v22  ;;  %v2569_v28 = vpop.f32.mrb[19].mxu1 }
 0x1a1   : > { %v1130_v29 = vadd.f32 %v2567_v23, %v2491_v20  ;;  %v2570_v30 = vadd.f32 %v2569_v28, %v2568_v24 }
 0x1a3   : > { %v1184_v32 = vadd.f32 %v1130_v29, %v442_v26  ;;  %v1133_v33 = vadd.f32 %v2570_v30, %v2494_v27 }
 0x1a4   : > { %v2495_v34 = vpop.f32.mrb[20].mxu0 }
 0x1a5   : > { %1204 = vst [vmem:[#allocation2 + $0x40] sm:$0xff] %v1184_v32  ;;  %v1185_v35 = vadd.f32 %v1133_v33, %v443_v31  ;;  %v2571_v36 = vpop.f32.mrb[20].mxu1  ;;  %v2496_v37 = vpop.f32.mrb[21].mxu0 }
 0x1a6   : > { %v2497_v38 = vadd.f32 %v2496_v37, %v2495_v34  ;;  %v2572_v39 = vpop.f32.mrb[21].mxu1  ;;  %v2498_v40 = vpop.f32.mrb[22].mxu0  ;;  %v450_v34 = vld [vmem:[#allocation2 + $0x80] sm:$0xff] }
 0x1a7   : > { %1205 = vst [vmem:[#allocation2 + $0x48] sm:$0xff] %v1185_v35  ;;  %v2573_v41 = vadd.f32 %v2572_v39, %v2571_v36  ;;  %v2574_v42 = vpop.f32.mrb[22].mxu1  ;;  %v2499_v43 = vpop.f32.mrb[23].mxu0  ;;  %v451_v39 = vld [vmem:[#allocation2 + $0x88] sm:$0xff] }
 0x1a8   : > { %v2500_v45 = vadd.f32 %v2499_v43, %v2498_v40  ;;  %v2575_v46 = vpop.f32.mrb[23].mxu1 }
 0x1a9   : > { %v1138_v47 = vadd.f32 %v2573_v41, %v2497_v38  ;;  %v2576_v48 = vadd.f32 %v2575_v46, %v2574_v42 }
 0x1ab   : > { %v1186_v50 = vadd.f32 %v1138_v47, %v444_v44  ;;  %v1141_v51 = vadd.f32 %v2576_v48, %v2500_v45 }
 0x1ac   : > { %v2501_v52 = vpop.f32.mrb[24].mxu0 }
 0x1ad   : > { %1206 = vst [vmem:[#allocation2 + $0x50] sm:$0xff] %v1186_v50  ;;  %v1187_v53 = vadd.f32 %v1141_v51, %v445_v49  ;;  %v2577_v54 = vpop.f32.mrb[24].mxu1  ;;  %v2502_v55 = vpop.f32.mrb[25].mxu0 }
 0x1ae   : > { %v2503_v56 = vadd.f32 %v2502_v55, %v2501_v52  ;;  %v2578_v57 = vpop.f32.mrb[25].mxu1  ;;  %v2504_v58 = vpop.f32.mrb[26].mxu0  ;;  %v452_v52 = vld [vmem:[#allocation2 + $0x90] sm:$0xff] }
 0x1af   : > { %1207 = vst [vmem:[#allocation2 + $0x58] sm:$0xff] %v1187_v53  ;;  %v2579_v59 = vadd.f32 %v2578_v57, %v2577_v54  ;;  %v2580_v60 = vpop.f32.mrb[26].mxu1  ;;  %v2505_v61 = vpop.f32.mrb[27].mxu0  ;;  %v453_v57 = vld [vmem:[#allocation2 + $0x98] sm:$0xff] }
 0x1b0   : > { %v2506_v63 = vadd.f32 %v2505_v61, %v2504_v58  ;;  %v2581_v0 = vpop.f32.mrb[27].mxu1  ;;  %v1242_v61 = vld [vmem:[%s3780_s1 + $0x10] sm:$0xff] (!%p2316_p6) }
 0x1b1   : > { %v1146_v1 = vadd.f32 %v2579_v59, %v2503_v56  ;;  %v2582_v2 = vadd.f32 %v2581_v0, %v2580_v60  ;;  %v1243_v0 = vld [vmem:[%s3780_s1 + $0x18] sm:$0xff] (!%p2316_p6) }
 0x1b3   : > { %v1188_v4 = vadd.f32 %v1146_v1, %v446_v62  ;;  %v1149_v5 = vadd.f32 %v2582_v2, %v2506_v63  ;;  %v1240_v62 = vld [vmem:[%s3780_s1] sm:$0xff] (!%p2316_p6)  ;;  %v3165_v63 = vmov (!%p2316_p6), 0   ;;  %v1241_v1 = vld [vmem:[%s3780_s1 + $0x8] sm:$0xff] (!%p2316_p6) }
 0x1b4   : > { %v2507_v6 = vpop.f32.mrb[28].mxu0  ;;  %2911 = vset.pattern.permute.xlu1 (!%p2316_p6), %v3165_v63  ;;  %2910 = vset.pattern.permute.xlu0 (!%p2316_p6), %v3165_v63  ;;  %v1245_v2 = vld [vmem:[%s3780_s1 + $0x28] sm:$0xff] (!%p2316_p6) }
 0x1b5   : > { %1208 = vst [vmem:[#allocation2 + $0x60] sm:$0xff] %v1188_v4  ;;  %v1189_v7 = vadd.f32 %v1149_v5, %v447_v3  ;;  %v2583_v8 = vpop.f32.mrb[28].mxu1  ;;  %v2508_v9 = vpop.f32.mrb[29].mxu0  ;;  %1272 = vperm.xlu1 (!%p2316_p6), %2911, %v1242_v61   ;;  %1262 = vperm.xlu0 (!%p2316_p6), %2910, %v1240_v62   ;;  %v1244_v3 = vld [vmem:[%s3780_s1 + $0x20] sm:$0xff] (!%p2316_p6) }
 0x1b6   : > { %v2509_v10 = vadd.f32 %v2508_v9, %v2507_v6  ;;  %v2584_v11 = vpop.f32.mrb[29].mxu1  ;;  %v2510_v12 = vpop.f32.mrb[30].mxu0  ;;  %v2912_v4 = vld [vmem:[#allocation8] sm:$0xff] (!%p2316_p6)   ;;  %v1247_v6 = vld [vmem:[%s3780_s1 + $0x38] sm:$0xff] (!%p2316_p6)  ;;  %v1246_v9 = vld [vmem:[%s3780_s1 + $0x30] sm:$0xff] (!%p2316_p6) }
 0x1b7   : > { %1209 = vst [vmem:[#allocation2 + $0x68] sm:$0xff] %v1189_v7  ;;  %v2585_v13 = vadd.f32 %v2584_v11, %v2583_v8  ;;  %v2586_v14 = vpop.f32.mrb[30].mxu1  ;;  %v2511_v15 = vpop.f32.mrb[31].mxu0  ;;  %v2913_v5 = vld [vmem:[%s3783_s4] sm:$0xff] (!%p2316_p6)   ;;  %2637 = vmatprep.subr.bf16.mxu1 (!%p2316_p6), %v2912_v4  ;;  %v2914_v7 = vld [vmem:[#allocation8 + $0x8] sm:$0xff] (!%p2316_p6)   ;;  %v2917_v11 = vld [vmem:[%s3783_s4 + $0x10] sm:$0xff] (!%p2316_p6)  }
 0x1b8   : > { %v2512_v17 = vadd.f32 %v2511_v15, %v2510_v12  ;;  %v2587_v18 = vpop.f32.mrb[31].mxu1  ;;  %v2915_v8 = vld [vmem:[%s3783_s4 + $0x8] sm:$0xff] (!%p2316_p6)   ;;  %2638 = vmatpush3.bf16.msra.mxu1 (!%p2316_p6), %v2912_v4  ;;  %2673 = vmatprep.subr.bf16.mxu0 (!%p2316_p6), %v2913_v5  ;;  %v2919_v15 = vld [vmem:[%s3783_s4 + $0x18] sm:$0xff] (!%p2316_p6)  }
 0x1b9   : > { %v1154_v19 = vadd.f32 %v2585_v13, %v2509_v10  ;;  %v2588_v20 = vadd.f32 %v2587_v18, %v2586_v14  ;;  %1277 = vperm.xlu1 (!%p2316_p6), %2911, %v1243_v0   ;;  %1267 = vperm.xlu0 (!%p2316_p6), %2910, %v1241_v1   ;;  %v2916_v10 = vld [vmem:[#allocation8 + $0x10] sm:$0xff] (!%p2316_p6)   ;;  %v1249_v12 = vld [vmem:[%s3780_s1 + $0x48] sm:$0xff] (!%p2316_p6)  ;;  %v1248_v13 = vld [vmem:[%s3780_s1 + $0x40] sm:$0xff] (!%p2316_p6) }
 0x1ba   : > { %2639 = vmatprep.subr.bf16.mxu1 (!%p2316_p6), %v2914_v7  ;;  %2674 = vmatpush3.bf16.msra.mxu0 (!%p2316_p6), %v2913_v5  ;;  %v2918_v14 = vld [vmem:[#allocation8 + $0x18] sm:$0xff] (!%p2316_p6)   ;;  %v2920_v18 = vld [vmem:[#allocation8 + $0x20] sm:$0xff] (!%p2316_p6)   ;;  %v1226_v1 = vld [vmem:[#allocation2 + $0x30] sm:$0xff] (!%p2316_p6) }
 0x1bb   : > { %v1190_v22 = vadd.f32 %v1154_v19, %v448_v16  ;;  %v1157_v23 = vadd.f32 %v2588_v20, %v2512_v17  ;;  %2675 = vmatprep.subr.bf16.mxu0 (!%p2316_p6), %v2915_v8  ;;  %v1251_v16 = vld [vmem:[%s3780_s1 + $0x58] sm:$0xff] (!%p2316_p6)  ;;  %v1250_v17 = vld [vmem:[%s3780_s1 + $0x50] sm:$0xff] (!%p2316_p6)  ;;  %v2921_v19 = vld [vmem:[%s3783_s4 + $0x20] sm:$0xff] (!%p2316_p6)  }
 0x1bc   : > { %v2513_v24 = vpop.f32.mrb[32].mxu0  ;;  %2640 = vmatpush3.bf16.msra.mxu1 (!%p2316_p6), %v2914_v7  ;;  %v1253_v20 = vld [vmem:[%s3780_s1 + $0x68] sm:$0xff] (!%p2316_p6)  ;;  %v1227_v0 = vld [vmem:[#allocation2 + $0x38] sm:$0xff] (!%p2316_p6) }
 0x1bd   : > { %1210 = vst [vmem:[#allocation2 + $0x70] sm:$0xff] %v1190_v22  ;;  %v1191_v25 = vadd.f32 %v1157_v23, %v449_v21  ;;  %v2589_v26 = vpop.f32.mrb[32].mxu1  ;;  %v2514_v27 = vpop.f32.mrb[33].mxu0  ;;  %1287 = vperm.xlu1 (!%p2316_p6), %2911, %v1245_v2   ;;  %1282 = vperm.xlu0 (!%p2316_p6), %2910, %v1244_v3   ;;  %v1252_v21 = vld [vmem:[%s3780_s1 + $0x60] sm:$0xff] (!%p2316_p6)  ;;  %v2922_v23 = vld [vmem:[#allocation8 + $0x28] sm:$0xff] (!%p2316_p6)  }
 0x1be   : > { %v2515_v28 = vadd.f32 %v2514_v27, %v2513_v24  ;;  %v2590_v29 = vpop.f32.mrb[33].mxu1  ;;  %v2516_v30 = vpop.f32.mrb[34].mxu0  ;;  %2641 = vmatprep.subr.bf16.mxu1 (!%p2316_p6), %v2916_v10  ;;  %2676 = vmatpush3.bf16.msra.mxu0 (!%p2316_p6), %v2915_v8  ;;  %v2927_v22 = vld [vmem:[%s3782_s3] sm:$0xff] (!%p2316_p6)   ;;  %v2923_v24 = vld [vmem:[%s3783_s4 + $0x28] sm:$0xff] (!%p2316_p6)   ;;  %v2924_v27 = vld [vmem:[#allocation8 + $0x30] sm:$0xff] (!%p2316_p6)  }
 0x1bf   : > { %1211 = vst [vmem:[#allocation2 + $0x78] sm:$0xff] %v1191_v25  ;;  %v2591_v31 = vadd.f32 %v2590_v29, %v2589_v26  ;;  %v2592_v32 = vpop.f32.mrb[34].mxu1  ;;  %v2517_v33 = vpop.f32.mrb[35].mxu0  ;;  %2677 = vmatprep.subr.bf16.mxu0 (!%p2316_p6), %v2917_v11  ;;  %2653 = vmatprep.mubr.bf16.mxu1 (!%p2316_p6), %v2927_v22  ;;  %v1255_v25 = vld [vmem:[%s3780_s1 + $0x78] sm:$0xff] (!%p2316_p6)  ;;  %v1254_v26 = vld [vmem:[%s3780_s1 + $0x70] sm:$0xff] (!%p2316_p6)  ;;  %v1257_v29 = vld [vmem:[%s3780_s1 + $0x88] sm:$0xff] (!%p2316_p6) }
 0x1c0   : > { %v2518_v35 = vadd.f32 %v2517_v33, %v2516_v30  ;;  %v2593_v36 = vpop.f32.mrb[35].mxu1  ;;  %2642 = vmatpush3.bf16.msra.mxu1 (!%p2316_p6), %v2916_v10  ;;  %v1256_v30 = vld [vmem:[%s3780_s1 + $0x80] sm:$0xff] (!%p2316_p6)  ;;  %v1259_v33 = vld [vmem:[%s3780_s1 + $0x98] sm:$0xff] (!%p2316_p6)  ;;  %v1229_v7 = vld [vmem:[#allocation2 + $0x48] sm:$0xff] (!%p2316_p6) }
 0x1c1   : > { %v1162_v37 = vadd.f32 %v2591_v31, %v2515_v28  ;;  %v2594_v38 = vadd.f32 %v2593_v36, %v2592_v32  ;;  %1297 = vperm.xlu1 (!%p2316_p6), %2911, %v1247_v6   ;;  %1292 = vperm.xlu0 (!%p2316_p6), %2910, %v1246_v9   ;;  %v2925_v28 = vld [vmem:[%s3783_s4 + $0x30] sm:$0xff] (!%p2316_p6)   ;;  %v2926_v31 = vld [vmem:[#allocation8 + $0x38] sm:$0xff] (!%p2316_p6)   ;;  %v1228_v8 = vld [vmem:[#allocation2 + $0x40] sm:$0xff] (!%p2316_p6) }
 0x1c2   : > { %2643 = vmatprep.subr.bf16.mxu1 (!%p2316_p6), %v2918_v14  ;;  %2678 = vmatpush3.bf16.msra.mxu0 (!%p2316_p6), %v2917_v11  ;;  %v2928_v32 = vld [vmem:[%s3783_s4 + $0x38] sm:$0xff] (!%p2316_p6)   ;;  %v2930_v36 = vld [vmem:[%s3782_s3 + $0x10] sm:$0xff] (!%p2316_p6)   ;;  %v1232_v22 = vld [vmem:[#allocation2 + $0x60] sm:$0xff] (!%p2316_p6) }
 0x1c3   : > { %v1192_v40 = vadd.f32 %v1162_v37, %v450_v34  ;;  %v1165_v41 = vadd.f32 %v2594_v38, %v2518_v35  ;;  %2679 = vmatprep.subr.bf16.mxu0 (!%p2316_p6), %v2919_v15  ;;  %v1258_v34 = vld [vmem:[%s3780_s1 + $0x90] sm:$0xff] (!%p2316_p6)  ;;  %v2929_v35 = vld [vmem:[%s3782_s3 + $0x8] sm:$0xff] (!%p2316_p6)   ;;  %v2931_v37 = vld [vmem:[%s3782_s3 + $0x18] sm:$0xff] (!%p2316_p6)  }
 0x1c4   : > { %v2519_v42 = vpop.f32.mrb[36].mxu0  ;;  %2644 = vmatpush3.bf16.msra.mxu1 (!%p2316_p6), %v2918_v14  ;;  %v2932_v38 = vld [vmem:[%s3782_s3 + $0x20] sm:$0xff] (!%p2316_p6)   ;;  %v1231_v14 = vld [vmem:[#allocation2 + $0x58] sm:$0xff] (!%p2316_p6) }
 0x1c5   : > { %1212 = vst [vmem:[#allocation2 + $0x80] sm:$0xff] %v1192_v40  ;;  %v1193_v43 = vadd.f32 %v1165_v41, %v451_v39  ;;  %v2595_v44 = vpop.f32.mrb[36].mxu1  ;;  %v2520_v45 = vpop.f32.mrb[37].mxu0  ;;  %1307 = vperm.xlu1 (!%p2316_p6), %2911, %v1249_v12   ;;  %1302 = vperm.xlu0 (!%p2316_p6), %2910, %v1248_v13   ;;  %v2933_v39 = vld [vmem:[%s3782_s3 + $0x28] sm:$0xff] (!%p2316_p6)   ;;  %v2934_v40 = vld [vmem:[%s3782_s3 + $0x30] sm:$0xff] (!%p2316_p6)   ;;  %v2935_v41 = vld [vmem:[%s3782_s3 + $0x38] sm:$0xff] (!%p2316_p6)  }
 0x1c6   : > { %v2521_v46 = vadd.f32 %v2520_v45, %v2519_v42  ;;  %v2596_v47 = vpop.f32.mrb[37].mxu1  ;;  %v2522_v48 = vpop.f32.mrb[38].mxu0  ;;  %2645 = vmatprep.subr.bf16.mxu1 (!%p2316_p6), %v2920_v18  ;;  %2680 = vmatpush3.bf16.msra.mxu0 (!%p2316_p6), %v2919_v15  ;;  %v2936_v42 = vld [vmem:[%s3782_s3 + $0x40] sm:$0xff] (!%p2316_p6)   ;;  %v1230_v15 = vld [vmem:[#allocation2 + $0x50] sm:$0xff] (!%p2316_p6) }
 0x1c7   : > { %1213 = vst [vmem:[#allocation2 + $0x88] sm:$0xff] %v1193_v43  ;;  %v2597_v49 = vadd.f32 %v2596_v47, %v2595_v44  ;;  %v2598_v50 = vpop.f32.mrb[38].mxu1  ;;  %v2523_v51 = vpop.f32.mrb[39].mxu0  ;;  %2681 = vmatprep.subr.bf16.mxu0 (!%p2316_p6), %v2921_v19  ;;  %v2937_v43 = vld [vmem:[%s3782_s3 + $0x48] sm:$0xff] (!%p2316_p6)   ;;  %v1220_v47 = vld [vmem:[#allocation2] sm:$0xff] (!%p2316_p6) }
 0x1c8   : > { %v2524_v53 = vadd.f32 %v2523_v51, %v2522_v48  ;;  %v2599_v54 = vpop.f32.mrb[39].mxu1  ;;  %2646 = vmatpush3.bf16.msra.mxu1 (!%p2316_p6), %v2920_v18  ;;  %v1223_v48 = vld [vmem:[#allocation2 + $0x18] sm:$0xff] (!%p2316_p6) }
 0x1c9   : > { %v1170_v55 = vadd.f32 %v2597_v49, %v2521_v46  ;;  %v2600_v56 = vadd.f32 %v2599_v54, %v2598_v50  ;;  %1219 = sbr.rel (%p2316_p6) target bundleno = 995 (0x3e3), region = 68  ;;  %1317 = vperm.xlu1 (!%p2316_p6), %2911, %v1251_v16   ;;  %1312 = vperm.xlu0 (!%p2316_p6), %2910, %v1250_v17   ;;  %v1222_v46 = vld [vmem:[#allocation2 + $0x10] sm:$0xff] (!%p2316_p6)  ;;  %v1221_v49 = vld [vmem:[#allocation2 + $0x8] sm:$0xff] (!%p2316_p6) }
 0x1ca   : > { %2647 = vmatprep.subr.bf16.mxu1 (!%p2316_p6), %v2922_v23  ;;  %2682 = vmatpush3.bf16.msra.mxu0 (!%p2316_p6), %v2921_v19 }
 0x1cb   : > { %v1194_v58 = vadd.f32 %v1170_v55, %v452_v52  ;;  %v1173_v59 = vadd.f32 %v2600_v56, %v2524_v53  ;;  %2683 = vmatprep.subr.bf16.mxu0 (!%p2316_p6), %v2923_v24  ;;  %v1225_v56 = vld [vmem:[#allocation2 + $0x28] sm:$0xff] (!%p2316_p6) }
 0x1cc   : > { %2648 = vmatpush3.bf16.msra.mxu1 (!%p2316_p6), %v2922_v23 }
 0x1cd   : > { %1214 = vst [vmem:[#allocation2 + $0x90] sm:$0xff] %v1194_v58  ;;  %v1195_v60 = vadd.f32 %v1173_v59, %v453_v57  ;;  %1327 = vperm.xlu1 (!%p2316_p6), %2911, %v1253_v20   ;;  %1322 = vperm.xlu0 (!%p2316_p6), %2910, %v1252_v21   ;;  %v1224_v57 = vld [vmem:[#allocation2 + $0x20] sm:$0xff] (!%p2316_p6)  ;;  %v1233_v21 = vld [vmem:[#allocation2 + $0x68] sm:$0xff] (!%p2316_p6) }
 0x1ce   : > { %2649 = vmatprep.subr.bf16.mxu1 (!%p2316_p6), %v2924_v27  ;;  %2684 = vmatpush3.bf16.msra.mxu0 (!%p2316_p6), %v2923_v24 }
 0x1cf   : > { %1215 = vst [vmem:[#allocation2 + $0x98] sm:$0xff] %v1195_v60  ;;  %2685 = vmatprep.subr.bf16.mxu0 (!%p2316_p6), %v2925_v28 }
 0x1d0   : > { %2650 = vmatpush3.bf16.msra.mxu1 %v2924_v27 }
 0x1d1   : > { %1337 = vperm.xlu1 %2911, %v1255_v25   ;;  %1332 = vperm.xlu0 %2910, %v1254_v26  }
 0x1d2   : > { %2651 = vmatprep.subr.bf16.mxu1 %v2926_v31  ;;  %2686 = vmatpush3.bf16.msra.mxu0 %v2925_v28  ;;  %v1235_v28 = vld [vmem:[#allocation2 + $0x78] sm:$0xff] }
 0x1d3   : > { %2687 = vmatprep.subr.bf16.mxu0 %v2928_v32 }
 0x1d4   : > { %2652 = vmatpush3.bf16.msra.mxu1 %v2926_v31 }
 0x1d5   : > { %1347 = vperm.xlu1 %2911, %v1257_v29   ;;  %1342 = vperm.xlu0 %2910, %v1256_v30   ;;  %v1234_v29 = vld [vmem:[#allocation2 + $0x70] sm:$0xff] }
 0x1d6   : > { %2688 = vmatpush3.bf16.msra.mxu0 %v2928_v32 }
 0x1d7   : > { %2654 = vmatmul.mubr.bf16.vlgmr.msra.gmra.mrb[0].mxu1 %v2929_v35  ;;  %v1237_v35 = vld [vmem:[#allocation2 + $0x88] sm:$0xff] }
 0x1d8   : > { %2657 = vmatprep.mubr.bf16.mxu1 %v2930_v36  ;;  %v1236_v36 = vld [vmem:[#allocation2 + $0x80] sm:$0xff] }
 0x1d9   : > { %1357 = vperm.xlu1 %2911, %v1259_v33   ;;  %1352 = vperm.xlu0 %2910, %v1258_v34  }
 0x1df   : > { %2658 = vmatmul.mubr.bf16.gmra.mrb[4].mxu1 %v2931_v37 }
 0x1e0   : > { %2661 = vmatprep.mubr.bf16.mxu1 %v2932_v38 }
 0x1e7   : > { %2662 = vmatmul.mubr.bf16.gmra.mrb[8].mxu1 %v2933_v39 }
 0x1e8   : > { %2665 = vmatprep.mubr.bf16.mxu1 %v2934_v40 }
 0x1ef   : > { %2666 = vmatmul.mubr.bf16.gmra.mrb[12].mxu1 %v2935_v41 }
 0x1f0   : > { %2669 = vmatprep.mubr.bf16.mxu1 %v2936_v42  ;;  %v1239_v42 = vld [vmem:[#allocation2 + $0x98] sm:$0xff] }
 0x1f7   : > { %2670 = vmatmul.mubr.bf16.gmra.mrb[16].mxu1 %v2937_v43  ;;  %v1238_v43 = vld [vmem:[#allocation2 + $0x90] sm:$0xff] }
 0x234   : > { %v1273_v44 = vpop.permute.xlu1 %1272  ;;  %v1263_v45 = vpop.permute.xlu0 %1262 }
 0x235   : > { %v1362_v52 = vmul.f32 %v1273_v44, %v1222_v46  ;;  %v1360_v53 = vmul.f32 %v1263_v45, %v1220_v47 }
 0x238   : > { %v1278_v50 = vpop.permute.xlu1 %1277  ;;  %v1268_v51 = vpop.permute.xlu0 %1267 }
 0x239   : > { %v1363_v54 = vmul.f32 %v1278_v50, %v1223_v48  ;;  %v1361_v55 = vmul.f32 %v1268_v51, %v1221_v49 }
 0x23b   : > { %v1381_v58 = vpack.c.bf16 %v1363_v54, %v1362_v52  ;;  %v1380_v59 = vpack.c.bf16 %v1361_v55, %v1360_v53 }
 0x23c   : > { %v1288_v60 = vpop.permute.xlu1 %1287  ;;  %v1283_v61 = vpop.permute.xlu0 %1282 }
 0x23d   : > { %v1365_v62 = vmul.f32 %v1288_v60, %v1225_v56  ;;  %v1364_v63 = vmul.f32 %v1283_v61, %v1224_v57  ;;  %2689 = vmatprep.mubr.bf16.mxu0 %v1380_v59 }
 0x23e   : > { %2690 = vmatmul.mubr.bf16.vlgmr.msra.gmra.mrb[0].mxu0 %v1381_v58 }
 0x23f   : > { %v1382_v2 = vpack.c.bf16 %v1365_v62, %v1364_v63 }
 0x240   : > { %v1298_v3 = vpop.permute.xlu1 %1297  ;;  %v1293_v4 = vpop.permute.xlu0 %1292 }
 0x241   : > { %v1367_v5 = vmul.f32 %v1298_v3, %v1227_v0  ;;  %v1366_v6 = vmul.f32 %v1293_v4, %v1226_v1  ;;  %2693 = vmatprep.mubr.bf16.mxu0 %v1382_v2 }
 0x243   : > { %v1383_v9 = vpack.c.bf16 %v1367_v5, %v1366_v6 }
 0x244   : > { %v1308_v10 = vpop.permute.xlu1 %1307  ;;  %v1303_v11 = vpop.permute.xlu0 %1302 }
 0x245   : > { %v1369_v12 = vmul.f32 %v1308_v10, %v1229_v7  ;;  %v1368_v13 = vmul.f32 %v1303_v11, %v1228_v8  ;;  %v3608_v7 = vld [vmem:[%s3785_s6] ss:$0 sm:$0xff] }
 0x246   : > { %2694 = vmatmul.mubr.bf16.gmra.mrb[4].mxu0 %v1383_v9 }
 0x247   : > { %v1384_v16 = vpack.c.bf16 %v1369_v12, %v1368_v13 }
 0x248   : > { %v1318_v17 = vpop.permute.xlu1 %1317  ;;  %v1313_v18 = vpop.permute.xlu0 %1312 }
 0x249   : > { %v1371_v19 = vmul.f32 %v1318_v17, %v1231_v14  ;;  %v1370_v20 = vmul.f32 %v1313_v18, %v1230_v15  ;;  %2697 = vmatprep.mubr.bf16.mxu0 %v1384_v16 }
 0x24b   : > { %v1385_v23 = vpack.c.bf16 %v1371_v19, %v1370_v20 }
 0x24c   : > { %v1328_v24 = vpop.permute.xlu1 %1327  ;;  %v1323_v25 = vpop.permute.xlu0 %1322 }
 0x24d   : > { %v1373_v26 = vmul.f32 %v1328_v24, %v1233_v21  ;;  %v1372_v27 = vmul.f32 %v1323_v25, %v1232_v22 }
 0x24e   : > { %2698 = vmatmul.mubr.bf16.gmra.mrb[8].mxu0 %v1385_v23 }
 0x24f   : > { %v1386_v30 = vpack.c.bf16 %v1373_v26, %v1372_v27 }
 0x250   : > { %v1338_v31 = vpop.permute.xlu1 %1337  ;;  %v1333_v32 = vpop.permute.xlu0 %1332 }
 0x251   : > { %v1375_v33 = vmul.f32 %v1338_v31, %v1235_v28  ;;  %v1374_v34 = vmul.f32 %v1333_v32, %v1234_v29  ;;  %2701 = vmatprep.mubr.bf16.mxu0 %v1386_v30 }
 0x253   : > { %v1387_v37 = vpack.c.bf16 %v1375_v33, %v1374_v34 }
 0x254   : > { %v1348_v38 = vpop.permute.xlu1 %1347  ;;  %v1343_v39 = vpop.permute.xlu0 %1342 }
 0x255   : > { %v1377_v40 = vmul.f32 %v1348_v38, %v1237_v35  ;;  %v1376_v41 = vmul.f32 %v1343_v39, %v1236_v36 }
 0x256   : > { %2702 = vmatmul.mubr.bf16.gmra.mrb[12].mxu0 %v1387_v37 }
 0x257   : > { %v1388_v44 = vpack.c.bf16 %v1377_v40, %v1376_v41 }
 0x258   : > { %v1358_v45 = vpop.permute.xlu1 %1357  ;;  %v1353_v46 = vpop.permute.xlu0 %1352 }
 0x259   : > { %v1379_v47 = vmul.f32 %v1358_v45, %v1239_v42  ;;  %v1378_v48 = vmul.f32 %v1353_v46, %v1238_v43  ;;  %2705 = vmatprep.mubr.bf16.mxu0 %v1388_v44 }
 0x25b   : > { %v1389_v49 = vpack.c.bf16 %v1379_v47, %v1378_v48 }
 0x25e   : > { %2706 = vmatmul.mubr.bf16.gmra.mrb[16].mxu0 %v1389_v49 }
 0x2aa   : > { %v2655_v50 = vpop.f32.mrb[0].mxu1 }
 0x2ab   : > { %v1584_v51 = vpop.f32.mrb[1].mxu1 }
 0x2ac   : > { %v2656_v52 = vpop.f32.mrb[2].mxu1 }
 0x2ad   : > { %v1587_v53 = vpop.f32.mrb[3].mxu1 }
 0x2b2   : > { %v2659_v54 = vpop.f32.mrb[4].mxu1 }
 0x2b3   : > { %v1600_v55 = vpop.f32.mrb[5].mxu1 }
 0x2b4   : > { %v2660_v56 = vpop.f32.mrb[6].mxu1 }
 0x2b5   : > { %v1603_v57 = vpop.f32.mrb[7].mxu1 }
 0x2ba   : > { %v2663_v58 = vpop.f32.mrb[8].mxu1 }
 0x2bb   : > { %v1616_v59 = vpop.f32.mrb[9].mxu1 }
 0x2bc   : > { %v2664_v60 = vpop.f32.mrb[10].mxu1 }
 0x2bd   : > { %v1619_v61 = vpop.f32.mrb[11].mxu1 }
 0x2c2   : > { %v3589_v62 = vpop.f32.mrb[12].mxu1 }
 0x2c3   : > { %v3591_v63 = vpop.f32.mrb[13].mxu1 }
 0x2c4   : > { %v3593_v0 = vpop.f32.mrb[14].mxu1 }
 0x2c5   : > { %v3595_v1 = vpop.f32.mrb[15].mxu1 }
 0x2ca   : > { %v3597_v2 = vpop.f32.mrb[16].mxu1 }
 0x2cb   : > { %v3599_v3 = vpop.f32.mrb[17].mxu1 }
 0x2cc   : > { %v3601_v4 = vpop.f32.mrb[18].mxu1 }
 0x2cd   : > { %v3603_v5 = vpop.f32.mrb[19].mxu1 }
 0x311   : > { %v2691_v6 = vpop.f32.mrb[0].mxu0 }
 0x312   : > { %v1754_v8 = vadd.f32 %v2691_v6, %v2655_v50  ;;  %v1745_v9 = vpop.f32.mrb[1].mxu0 }
 0x313   : > { %v1746_v10 = vadd.f32 %v1745_v9, %v1584_v51  ;;  %v2692_v11 = vpop.f32.mrb[2].mxu0 }
 0x314   : > { %v3611_v12 = vadd.f32 %v3608_v7, %v1754_v8  ;;  %v1757_v13 = vadd.f32 %v2692_v11, %v2656_v52  ;;  %v1748_v14 = vpop.f32.mrb[3].mxu0 }
 0x315   : > { %v1749_v15 = vadd.f32 %v1748_v14, %v1587_v53  ;;  %v3614_v16 = vadd.f32 %v3608_v7, %v1746_v10 }
 0x316   : > { %v1853_v17 = vmul.f32 %v3611_v12, %v3611_v12  ;;  %v3624_v21 = vadd.f32 %v3608_v7, %v1757_v13 }
 0x317   : > { %v3619_v18 = vadd.f32 %v3608_v7, %v1749_v15  ;;  %v1851_v24 = vmul.f32 %v3614_v16, %v3614_v16 }
 0x318   : > { %1875 = vadd.xlane.f32.xlu0 %v1853_v17  ;;  %v1854_v34 = vmul.f32 %v3624_v21, %v3624_v21 }
 0x319   : > { %v2695_v19 = vpop.f32.mrb[4].mxu0  ;;  %v1852_v20 = vmul.f32 %v3619_v18, %v3619_v18 }
 0x31a   : > { %v1770_v22 = vadd.f32 %v2695_v19, %v2659_v54  ;;  %v1761_v23 = vpop.f32.mrb[5].mxu0 }
 0x31b   : > { %v1762_v25 = vadd.f32 %v1761_v23, %v1600_v55  ;;  %v2696_v26 = vpop.f32.mrb[6].mxu0  ;;  %1873 = vadd.xlane.f32.xlu1 %v1852_v20 }
 0x31c   : > { %v3629_v27 = vadd.f32 %v3608_v7, %v1770_v22  ;;  %v1773_v28 = vadd.f32 %v2696_v26, %v2660_v56  ;;  %v1764_v29 = vpop.f32.mrb[7].mxu0  ;;  %1871 = vadd.xlane.f32.xlu0 %v1851_v24 }
 0x31d   : > { %v1765_v30 = vadd.f32 %v1764_v29, %v1603_v57  ;;  %v3632_v31 = vadd.f32 %v3608_v7, %v1762_v25 }
 0x31e   : > { %v3635_v32 = vadd.f32 %v3608_v7, %v1773_v28  ;;  %v1857_v33 = vmul.f32 %v3629_v27, %v3629_v27 }
 0x31f   : > { %v3642_v36 = vadd.f32 %v3608_v7, %v1765_v30  ;;  %v1855_v39 = vmul.f32 %v3632_v31, %v3632_v31 }
 0x320   : > { %1883 = vadd.xlane.f32.xlu1 %v1857_v33  ;;  %1877 = vadd.xlane.f32.xlu0 %v1854_v34  ;;  %v1858_v40 = vmul.f32 %v3635_v32, %v3635_v32 }
 0x321   : > { %v2699_v35 = vpop.f32.mrb[8].mxu0  ;;  %v1856_v50 = vmul.f32 %v3642_v36, %v3642_v36 }
 0x322   : > { %v1786_v37 = vadd.f32 %v2699_v35, %v2663_v58  ;;  %v1777_v38 = vpop.f32.mrb[9].mxu0 }
 0x323   : > { %v1778_v41 = vadd.f32 %v1777_v38, %v1616_v59  ;;  %v2700_v42 = vpop.f32.mrb[10].mxu0 }
 0x324   : > { %v3649_v43 = vadd.f32 %v3608_v7, %v1786_v37  ;;  %v1789_v44 = vadd.f32 %v2700_v42, %v2664_v60  ;;  %v1780_v45 = vpop.f32.mrb[11].mxu0  ;;  %1879 = vadd.xlane.f32.xlu1 %v1855_v39  ;;  %1885 = vadd.xlane.f32.xlu0 %v1858_v40 }
 0x325   : > { %v1781_v46 = vadd.f32 %v1780_v45, %v1619_v61  ;;  %v3652_v47 = vadd.f32 %v3608_v7, %v1778_v41 }
 0x326   : > { %v3655_v48 = vadd.f32 %v3608_v7, %v1789_v44  ;;  %v1861_v49 = vmul.f32 %v3649_v43, %v3649_v43 }
 0x327   : > { %v3662_v52 = vadd.f32 %v3608_v7, %v1781_v46  ;;  %v1859_v55 = vmul.f32 %v3652_v47, %v3652_v47 }
 0x328   : > { %1891 = vadd.xlane.f32.xlu1 %v1861_v49  ;;  %1881 = vadd.xlane.f32.xlu0 %v1856_v50  ;;  %v1862_v56 = vmul.f32 %v3655_v48, %v3655_v48 }
 0x329   : > { %v2703_v51 = vpop.f32.mrb[12].mxu0  ;;  %v1860_v9 = vmul.f32 %v3662_v52, %v3662_v52 }
 0x32a   : > { %v1802_v53 = vadd.f32 %v2703_v51, %v3589_v62  ;;  %v1793_v54 = vpop.f32.mrb[13].mxu0 }
 0x32b   : > { %v1794_v57 = vadd.f32 %v1793_v54, %v3591_v63  ;;  %v2704_v58 = vpop.f32.mrb[14].mxu0 }
 0x32c   : > { %v3671_v59 = vadd.f32 %v3608_v7, %v1802_v53  ;;  %v1805_v60 = vadd.f32 %v2704_v58, %v3593_v0  ;;  %v1796_v61 = vpop.f32.mrb[15].mxu0  ;;  %1887 = vadd.xlane.f32.xlu1 %v1859_v55  ;;  %1893 = vadd.xlane.f32.xlu0 %v1862_v56 }
 0x32d   : > { %v1797_v62 = vadd.f32 %v1796_v61, %v3595_v1  ;;  %v3676_v6 = vadd.f32 %v3608_v7, %v1794_v57 }
 0x32e   : > { %v3679_v8 = vadd.f32 %v3608_v7, %v1805_v60  ;;  %v1865_v63 = vmul.f32 %v3671_v59, %v3671_v59 }
 0x32f   : > { %v3686_v10 = vadd.f32 %v3608_v7, %v1797_v62  ;;  %v1863_v13 = vmul.f32 %v3676_v6, %v3676_v6 }
 0x330   : > { %1899 = vadd.xlane.f32.xlu1 %v1865_v63  ;;  %1889 = vadd.xlane.f32.xlu0 %v1860_v9  ;;  %v1866_v14 = vmul.f32 %v3679_v8, %v3679_v8 }
 0x331   : > { %v2707_v0 = vpop.f32.mrb[16].mxu0  ;;  %v1864_v23 = vmul.f32 %v3686_v10, %v3686_v10 }
 0x332   : > { %v1818_v1 = vadd.f32 %v2707_v0, %v3597_v2  ;;  %v1809_v11 = vpop.f32.mrb[17].mxu0 }
 0x333   : > { %v1810_v15 = vadd.f32 %v1809_v11, %v3599_v3  ;;  %v2708_v17 = vpop.f32.mrb[18].mxu0 }
 0x334   : > { %v1821_v19 = vadd.f32 %v2708_v17, %v3601_v4  ;;  %v1812_v20 = vpop.f32.mrb[19].mxu0  ;;  %1895 = vadd.xlane.f32.xlu1 %v1863_v13  ;;  %1901 = vadd.xlane.f32.xlu0 %v1866_v14  ;;  %v3702_v24 = vadd.f32 %v3608_v7, %v1818_v1 }
 0x335   : > { %v3696_v22 = vadd.f32 %v3608_v7, %v1810_v15  ;;  %v1813_v2 = vadd.f32 %v1812_v20, %v3603_v5 }
 0x336   : > { %v3712_v26 = vadd.f32 %v3608_v7, %v1821_v19  ;;  %v1869_v5 = vmul.f32 %v3702_v24, %v3702_v24 }
 0x337   : > { %v3705_v25 = vadd.f32 %v3608_v7, %v1813_v2  ;;  %v1867_v3 = vmul.f32 %v3696_v22, %v3696_v22 }
 0x338   : > { %1897 = vadd.xlane.f32.xlu0 %v1864_v23  ;;  %v1870_v28 = vmul.f32 %v3712_v26, %v3712_v26 }
 0x339   : > { %1903 = vadd.xlane.f32.xlu1 %v1867_v3  ;;  %v1868_v4 = vmul.f32 %v3705_v25, %v3705_v25 }
 0x33c   : > { %1905 = vadd.xlane.f32.xlu0 %v1868_v4 }
 0x33d   : > { %1907 = vadd.xlane.f32.xlu1 %v1869_v5 }
 0x340   : > { %1909 = vadd.xlane.f32.xlu0 %v1870_v28 }
 0x3a5   : > { %v1876_v29 = vpop.xlane.xlu0 %1875 }
 0x3a6   : > { %v1913_v33 = vmax.f32 %v1876_v29, 1e-24 }
 0x3a8   : > { %v1874_v30 = vpop.xlane.xlu1 %1873 }
 0x3a9   : > { %v1912_v34 = vmax.f32 %v1874_v30, 1e-24  ;;  %v1872_v35 = vpop.xlane.xlu0 %1871 }
 0x3aa   : > { %v1911_v37 = vmax.f32 %v1872_v35, 1e-24 }
 0x3ab   : > { %2938 = vrsqrt.f32 %v1912_v34 }
 0x3ac   : > { %2940 = vrsqrt.f32 %v1911_v37 }
 0x3ad   : > { %2942 = vrsqrt.f32 %v1913_v33  ;;  %v1884_v7 = vpop.xlane.xlu1 %1883  ;;  %v1878_v38 = vpop.xlane.xlu0 %1877 }
 0x3ae   : > { %v1917_v39 = vmax.f32 %v1884_v7, 1e-24  ;;  %v1914_v40 = vmax.f32 %v1878_v38, 1e-24 }
 0x3b0   : > { %2944 = vrsqrt.f32 %v1917_v39 }
 0x3b1   : > { %2946 = vrsqrt.f32 %v1914_v40  ;;  %v1880_v41 = vpop.xlane.xlu1 %1879  ;;  %v1886_v42 = vpop.xlane.xlu0 %1885 }
 0x3b2   : > { %v1915_v44 = vmax.f32 %v1880_v41, 1e-24  ;;  %v1918_v45 = vmax.f32 %v1886_v42, 1e-24 }
 0x3b4   : > { %2948 = vrsqrt.f32 %v1915_v44 }
 0x3b5   : > { %v2939_v46 = vpop.eup %2938  ;;  %2950 = vrsqrt.f32 %v1918_v45  ;;  %v1892_v49 = vpop.xlane.xlu1 %1891 }
 0x3b6   : > { %v1882_v50 = vpop.xlane.xlu0 %1881  ;;  %v2941_v51 = vpop.eup %2940  ;;  %v1952_v53 = vmul.f32 %v2939_v46, %v3619_v18  ;;  %v1921_v54 = vmax.f32 %v1892_v49, 1e-24 }
 0x3b7   : > { %v1916_v55 = vmax.f32 %v1882_v50, 1e-24  ;;  %v2943_v56 = vpop.eup %2942  ;;  %v1951_v57 = vmul.f32 %v2941_v51, %v3614_v16 }
 0x3b8   : > { %v1972_v58 = vmax.f32 %v1952_v53, 0.0  ;;  %2952 = vrsqrt.f32 %v1921_v54  ;;  %v1953_v9 = vmul.f32 %v2943_v56, %v3611_v12 }
 0x3b9   : > { %v1971_v60 = vmax.f32 %v1951_v57, 0.0  ;;  %2954 = vrsqrt.f32 %v1916_v55  ;;  %v1888_v61 = vpop.xlane.xlu1 %1887 }
 0x3ba   : > { %v1894_v62 = vpop.xlane.xlu0 %1893  ;;  %v2945_v63 = vpop.eup %2944  ;;  %v1919_v0 = vmax.f32 %v1888_v61, 1e-24  ;;  %v1973_v19 = vmax.f32 %v1953_v9, 0.0 }
 0x3bb   : > { %v1922_v1 = vmax.f32 %v1894_v62, 1e-24  ;;  %v2947_v11 = vpop.eup %2946  ;;  %v2393_v13 = vpack.c.bf16 %v1972_v58, %v1971_v60  ;;  %v1957_v14 = vmul.f32 %v2945_v63, %v3629_v27 }
 0x3bc   : > { %v1954_v18 = vmul.f32 %v2947_v11, %v3624_v21  ;;  %2956 = vrsqrt.f32 %v1919_v0 }
 0x3bd   : > { %2394 = vst [vmem:[#allocation9] sm:$0xff] %v2393_v13   ;;  %2958 = vrsqrt.f32 %v1922_v1  ;;  %v1900_v16 = vpop.xlane.xlu1 %1899  ;;  %v1977_v5 = vmax.f32 %v1957_v14, 0.0 }
 0x3be   : > { %v1890_v15 = vpop.xlane.xlu0 %1889  ;;  %v2949_v17 = vpop.eup %2948  ;;  %v1974_v20 = vmax.f32 %v1954_v18, 0.0  ;;  %v1925_v2 = vmax.f32 %v1900_v16, 1e-24 }
 0x3bf   : > { %v1920_v23 = vmax.f32 %v1890_v15, 1e-24  ;;  %v2951_v3 = vpop.eup %2950  ;;  %v1955_v27 = vmul.f32 %v2949_v17, %v3632_v31 }
 0x3c0   : > { %v2398_v12 = vpack.c.bf16 %v1974_v20, %v1973_v19  ;;  %v1958_v4 = vmul.f32 %v2951_v3, %v3635_v32  ;;  %2960 = vrsqrt.f32 %v1925_v2 }
 0x3c1   : > { %2962 = vrsqrt.f32 %v1920_v23  ;;  %v1896_v21 = vpop.xlane.xlu1 %1895  ;;  %v1975_v39 = vmax.f32 %v1955_v27, 0.0 }
 0x3c2   : > { %v1902_v28 = vpop.xlane.xlu0 %1901  ;;  %v2953_v29 = vpop.eup %2952  ;;  %2440 = vst [vmem:[#allocation9 + $0x8] sm:$0xff] %v2398_v12   ;;  %v1978_v30 = vmax.f32 %v1958_v4, 0.0  ;;  %v1923_v33 = vmax.f32 %v1896_v21, 1e-24 }
 0x3c3   : > { %v1926_v34 = vmax.f32 %v1902_v28, 1e-24  ;;  %v2955_v35 = vpop.eup %2954  ;;  %v1961_v40 = vmul.f32 %v2953_v29, %v3649_v43 }
 0x3c4   : > { %v2408_v37 = vpack.c.bf16 %v1978_v30, %v1977_v5  ;;  %v1956_v7 = vmul.f32 %v2955_v35, %v3642_v36  ;;  %2964 = vrsqrt.f32 %v1923_v33 }
 0x3c5   : > { %2966 = vrsqrt.f32 %v1926_v34  ;;  %v1981_v51 = vmax.f32 %v1961_v40, 0.0 }
 0x3c6   : > { %v1898_v38 = vpop.xlane.xlu0 %1897  ;;  %v2957_v32 = vpop.eup %2956  ;;  %2442 = vst [vmem:[#allocation9 + $0x18] sm:$0xff] %v2408_v37   ;;  %v1976_v41 = vmax.f32 %v1956_v7, 0.0 }
 0x3c7   : > { %v1924_v42 = vmax.f32 %v1898_v38, 1e-24  ;;  %v1904_v44 = vpop.xlane.xlu1 %1903  ;;  %v2959_v45 = vpop.eup %2958  ;;  %v1959_v53 = vmul.f32 %v2957_v32, %v3652_v47 }
 0x3c8   : > { %v1927_v31 = vmax.f32 %v1904_v44, 1e-24  ;;  %v2403_v46 = vpack.c.bf16 %v1976_v41, %v1975_v39  ;;  %v1962_v49 = vmul.f32 %v2959_v45, %v3655_v48 }
 0x3c9   : > { %2968 = vrsqrt.f32 %v1924_v42  ;;  %v1979_v62 = vmax.f32 %v1959_v53, 0.0 }
 0x3ca   : > { %2970 = vrsqrt.f32 %v1927_v31  ;;  %v1906_v50 = vpop.xlane.xlu0 %1905  ;;  %v2961_v36 = vpop.eup %2960  ;;  %2441 = vst [vmem:[#allocation9 + $0x10] sm:$0xff] %v2403_v46   ;;  %v1982_v54 = vmax.f32 %v1962_v49, 0.0 }
 0x3cb   : > { %v1928_v55 = vmax.f32 %v1906_v50, 1e-24  ;;  %v1908_v56 = vpop.xlane.xlu1 %1907  ;;  %v2963_v43 = vpop.eup %2962  ;;  %v1965_v63 = vmul.f32 %v2961_v36, %v3671_v59 }
 0x3cc   : > { %v1929_v57 = vmax.f32 %v1908_v56, 1e-24  ;;  %v2418_v58 = vpack.c.bf16 %v1982_v54, %v1981_v51  ;;  %v1960_v60 = vmul.f32 %v2963_v43, %v3662_v52 }
 0x3cd   : > { %2972 = vrsqrt.f32 %v1928_v55  ;;  %v1985_v14 = vmax.f32 %v1965_v63, 0.0 }
 0x3ce   : > { %2974 = vrsqrt.f32 %v1929_v57  ;;  %v1910_v61 = vpop.xlane.xlu0 %1909  ;;  %v2965_v48 = vpop.eup %2964  ;;  %2444 = vst [vmem:[#allocation9 + $0x28] sm:$0xff] %v2418_v58   ;;  %v1980_v9 = vmax.f32 %v1960_v60, 0.0 }
 0x3cf   : > { %v1930_v0 = vmax.f32 %v1910_v61, 1e-24  ;;  %v2967_v1 = vpop.eup %2966  ;;  %v1963_v13 = vmul.f32 %v2965_v48, %v3676_v6 }
 0x3d0   : > { %v2413_v47 = vpack.c.bf16 %v1980_v9, %v1979_v62  ;;  %v1966_v11 = vmul.f32 %v2967_v1, %v3679_v8 }
 0x3d1   : > { %2976 = vrsqrt.f32 %v1930_v0  ;;  %v1983_v19 = vmax.f32 %v1963_v13, 0.0 }
 0x3d2   : > { %2443 = vst [vmem:[#allocation9 + $0x20] sm:$0xff] %v2413_v47   ;;  %v1986_v52 = vmax.f32 %v1966_v11, 0.0 }
 0x3d3   : > { %v2969_v18 = vpop.eup %2968 }
 0x3d4   : > { %v2971_v16 = vpop.eup %2970  ;;  %v1964_v15 = vmul.f32 %v2969_v18, %v3686_v10  ;;  %v2428_v17 = vpack.c.bf16 %v1986_v52, %v1985_v14 }
 0x3d5   : > { %v1967_v59 = vmul.f32 %v2971_v16, %v3696_v22 }
 0x3d6   : > { %v1984_v20 = vmax.f32 %v1964_v15, 0.0  ;;  %2446 = vst [vmem:[#allocation9 + $0x38] sm:$0xff] %v2428_v17  }
 0x3d7   : > { %v2973_v2 = vpop.eup %2972  ;;  %v1987_v6 = vmax.f32 %v1967_v59, 0.0 }
 0x3d8   : > { %v2975_v23 = vpop.eup %2974  ;;  %v2423_v3 = vpack.c.bf16 %v1984_v20, %v1983_v19  ;;  %v1968_v8 = vmul.f32 %v2973_v2, %v3705_v25 }
 0x3d9   : > { %v1969_v4 = vmul.f32 %v2975_v23, %v3702_v24 }
 0x3da   : > { %2445 = vst [vmem:[#allocation9 + $0x30] sm:$0xff] %v2423_v3   ;;  %v1988_v12 = vmax.f32 %v1968_v8, 0.0 }
 0x3db   : > { %v2977_v5 = vpop.eup %2976  ;;  %v1989_v28 = vmax.f32 %v1969_v4, 0.0 }
 0x3dc   : > { %v2433_v21 = vpack.c.bf16 %v1988_v12, %v1987_v6  ;;  %v1970_v10 = vmul.f32 %v2977_v5, %v3712_v26 }
 0x3de   : > { %2447 = vst [vmem:[#allocation9 + $0x40] sm:$0xff] %v2433_v21   ;;  %v1990_v29 = vmax.f32 %v1970_v10, 0.0 }
 0x3e0   : > { %v2438_v27 = vpack.c.bf16 %v1990_v29, %v1989_v28 }
 0x3e2   : > { %2448 = vst [vmem:[#allocation9 + $0x48] sm:$0xff] %v2438_v27  }
 0x3e3 PF: > { %p2757_p8 = scmp.eq.s32.totalorder %s3238_s30, 1  ;;  %s3166_s19 = smov [#allocation9]  }
 0x3e4   : > { %s2100_s11 = sshll.u32 %s3166_s19, 4  ;;  %s2101_s11 = int_to_ptr.vmem [resolvable:$true] %s2100_s11 }
 0x3e5   : > { %s3066_s14 = scalar_lea.vmem %s2101_s11, 1280  ;;  %p3073_p0 = scmp.lt.s32.totalorder %s2101_s11, %s2101_s11 }
 0x3e6   : > { %p3067_p13 = scmp.ne.s32.totalorder %s2101_s11, %s3066_s14  ;;  %p3074_p4 = scmp.lt.s32.totalorder %s3066_s14, %s3066_s14 }
 0x3e8   : > { %p3068_p1 = pnand %p3067_p13, %p2757_p8  ;;  %p3075_p7 = por %p3074_p4, %p3073_p0 }
 0x3ea   : > { %p3069_p2 = pneg %p3068_p1 }
 0x3ec   : > { %p3076_p9 = pnand %p3075_p7, %p3069_p2 }
 0x3ee   : > { %3079 = shalt.err (!%p3076_p9)
}
 0x3ef   : > { %s3080_s17 = scalar_lea.hbm %s3786_s7, 1280 }
 0x3f0   : > { %p3081_p12 = scmp.ne.s32.totalorder %s3786_s7, %s3080_s17  ;;  %p3086_p10 = scmp.lt.u32.totalorder %s3080_s17, %s3786_s7 }
 0x3f2   : > { %p3082_p5 = pnand %p3081_p12, %p2757_p8 }
 0x3f4   : > { %p3083_p11 = pneg %p3082_p5 }
 0x3f6   : > { %p3088_p3 = pnand %p3086_p10, %p3083_p11 }
 0x3f8   : > { %3091 = shalt.err (!%p3088_p3)
}
 0x3f9   : > { %s3167_s16 = smov 64   ;;  %s3168_s5 = smov 4  }
 0x3fa   : > { %2740 = dma.vmem_to_hbm [thread:$0]  (%p2757_p8), %s2101_s11, 1280, %s3786_s7, [#allocation5], %s3167_s16, %s3167_s16, %s3168_s5  }
 0x3fb   : > { %3129 = dma.done.wait (%p2757_p8), [#allocation5], 1280  }
 0x3fc   : > { %3131 = vsyncadd (%p2757_p8), [#allocation5], 4294966016 }
 0x3fd PF: > { %s24_s29 = sadd.s32 1, %s3154_s29   ;;  %s3814_s20 = sld [smem:[#allocation14_spill]] }
 0x3fe   : > { %p21_p6 = scmp.ge.s32.totalorder %s24_s29, 4   ;;  %s3815_s26 = sld [smem:[#allocation16_spill]] }
 0x3ff   : > { %s3816_s21 = sld [smem:[#allocation15_spill]]  ;;  %s3817_s24 = smov %s3138_s25 }
 0x400   : > { %s3819_s27 = smov %s3150_s28  ;;  %23 = sbr.rel (!%p21_p6) target bundleno = 10 (0xa), region = 117 }
 0x403   : > { %s3818_s25 = smov %s3814_s20 }
 0x405   : > { %s3820_s28 = smov %s3816_s21 }
 0x407   :  { %2116 = vsyncpa [#allocation4], 1 }
 0x408   :  { %2118 = vsyncpa [#allocation4 + $0x1], 1 }
 0x409   :  { %2119 = vsyncpa [#allocation7], 1 }
 0x40a   :  { %2121 = vsyncpa [#allocation7 + $0x1], 1 }
 0x40b   :  { %2122 = vsyncpa [#allocation5], 1 }
 0x40c   :  { %2124 = vsyncpa [#allocation5 + $0x1], 1 }

</bundles_post_ra>
